<compile_context>
chip_gen: v5e
topology: v5e:2x2
jax: 0.10.0
libtpu: 0.0.40
codegen_flags: <defaults>
</compile_context>

<pallas_src>
import math

import jax
import jax.numpy as jnp
from jax.experimental import pallas as pl
from jax.experimental.pallas import tpu as pltpu


# ----------------------------------------------------------------------------
# Parameter construction (Xavier-uniform weights, 0.01 bias — as in PyTorch)
# ----------------------------------------------------------------------------
_LAYER_DIMS = [
    ("embedding_l1", None, 256),   # `None` in-dim filled with input_size
    ("embedding_l2", 256, 128),
    ("embedding_l3", 128, 64),
    ("feature_l1", 64, 80),
    ("feature_l2", 80, 50),
    ("feature_l3", 50, 30),
    ("score_l1", 64, 60),
    ("score_l2", 60, 50),
    ("score_l3", 50, 1),
]


def init_params(input_size, key):
    params = []
    for (_, fan_in, fan_out) in _LAYER_DIMS:
        if fan_in is None:
            fan_in = input_size
        key, sub = jax.random.split(key)
        bound = math.sqrt(6.0 / (fan_in + fan_out))
        w = jax.random.uniform(sub, (fan_in, fan_out), jnp.float32, -bound, bound)
        b = jnp.full((1, fan_out), 0.01, jnp.float32)
        params.append((w, b))
    return params


# ----------------------------------------------------------------------------
# Parameter packing: fuse heads, pad to 128-lane segments, pack into two slabs
# ----------------------------------------------------------------------------
def pack_params(params):
    """Fuse / pad per-layer params into one bf16 weight slab + one f32 bias slab.

    Exactness of every padded region relies on the padded bias columns / weight
    rows being ZERO (ReLU(0 @ W_pad + 0) = 0).  Keep that invariant if the
    layout changes.

    Weight slab (256, 1024) bf16, 128-aligned lane segments:
        [:,    0:128 ] embedding_l2            (256,128)
        [0:128,128:256] embedding_l3 padded    (128,128)  out cols 64:128 = 0
        [0:128,256:512] feature_l1|score_l1    (128,256)  K rows 64:128 = 0
        [:,  512:768 ] feature_l2|score_l2     (256,256)  block-diagonal
        [:,  768:1024] feature_l3|score_l3     (256,256)  score -> col 128
    Bias slab (1, 1280) f32: segments at 0,256,384,512,768,1024 matching above
    (embedding_l1 bias first at 0:256).
    """
    (we1, be1), (we2, be2), (we3, be3), \
        (wf1, bf1), (wf2, bf2), (wf3, bf3), \
        (ws1, bs1), (ws2, bs2), (ws3, bs3) = params
    f32 = jnp.float32

    # embedding_l3 padded to 128 output lanes
    w_e3p = jnp.zeros((128, 128), f32).at[:, 0:64].set(we3)
    b_e3p = jnp.zeros((1, 128), f32).at[:, 0:64].set(be3)

    # fused head-l1 (feature cols 0:80, score cols 128:188); K padded 64->128
    w_h1 = jnp.zeros((128, 256), f32).at[0:64, 0:80].set(wf1).at[0:64, 128:188].set(ws1)
    b_h1 = jnp.zeros((1, 256), f32).at[:, 0:80].set(bf1).at[:, 128:188].set(bs1)

    # fused head-l2, block-diagonal: rows 0:80 -> cols 0:50, rows 128:188 -> cols 128:178
    w_h2 = jnp.zeros((256, 256), f32).at[0:80, 0:50].set(wf2).at[128:188, 128:178].set(ws2)
    b_h2 = jnp.zeros((1, 256), f32).at[:, 0:50].set(bf2).at[:, 128:178].set(bs2)

    # fused head-l3: feature cols 0:30, score col 128
    w_h3 = jnp.zeros((256, 256), f32).at[0:50, 0:30].set(wf3).at[128:178, 128:129].set(ws3)
    b_h3 = jnp.zeros((1, 256), f32).at[:, 0:30].set(bf3).at[:, 128:129].set(bs3)

    w_slab = jnp.zeros((256, 1024), f32)
    w_slab = w_slab.at[0:256, 0:128].set(we2)
    w_slab = w_slab.at[0:128, 128:256].set(w_e3p)
    w_slab = w_slab.at[0:128, 256:512].set(w_h1)
    w_slab = w_slab.at[0:256, 512:768].set(w_h2)
    w_slab = w_slab.at[0:256, 768:1024].set(w_h3)

    b_slab = jnp.zeros((1, 1280), f32)
    b_slab = b_slab.at[:, 0:256].set(be1)
    b_slab = b_slab.at[:, 256:384].set(be2)
    b_slab = b_slab.at[:, 384:512].set(b_e3p)
    b_slab = b_slab.at[:, 512:768].set(b_h1)
    b_slab = b_slab.at[:, 768:1024].set(b_h2)
    b_slab = b_slab.at[:, 1024:1280].set(b_h3)

    return we1.astype(jnp.bfloat16), w_slab.astype(jnp.bfloat16), b_slab


# ----------------------------------------------------------------------------
# Pallas kernel: full Attention forward for one batch tile (flattened M = tb*S)
# ----------------------------------------------------------------------------
def _make_kernel(tb, n_section):
    S = n_section

    def kernel(x_ref, w_e1_ref, w_ref, b_ref, out_ref):
        bf16 = jnp.bfloat16

        def dense(h, w, b, relu=True):
            # bf16 MXU matmul, f32 accumulate; ReLU fused with the bf16 down-cast.
            y = jnp.dot(h, w, preferred_element_type=jnp.float32) + b
            return jnp.maximum(y, 0.0).astype(bf16) if relu else y

        x = x_ref[...]                                            # (M, D_in) bf16

        # ---- embedding trunk: one large 2-D MXU matmul per layer ----
        a = dense(x, w_e1_ref[...], b_ref[:, 0:256])              # (M, 256)
        a = dense(a, w_ref[:, 0:128], b_ref[:, 256:384])          # (M, 128)
        a = dense(a, w_ref[0:128, 128:256], b_ref[:, 384:512])    # (M, 128) cols 64: = 0

        # ---- fused heads: feature lanes 0:128, score lanes 128:256 ----
        h = dense(a, w_ref[0:128, 256:512], b_ref[:, 512:768])    # (M, 256) l1
        h = dense(h, w_ref[:, 512:768], b_ref[:, 768:1024])       # (M, 256) l2 (blk-diag)
        h = dense(h, w_ref[:, 768:1024], b_ref[:, 1024:1280],     # (M, 256) l3, f32
                  relu=False)

        # ---- softmax over sections + weighted pool + tanh ----
        # only relayout in the kernel: one f32 (M,256) -> (tb,S,256) regroup
        h3 = h.reshape(tb, S, 256)
        f = h3[:, :, 0:128]                                       # feature (cols 30: = 0)
        s = h3[:, :, 128:129]                                     # score
        s_max = jnp.max(s, axis=1, keepdims=True)
        e = jnp.exp(s - s_max)
        attn = e / jnp.sum(e, axis=1, keepdims=True)              # exact reciprocal
        pooled = jnp.sum(f * attn, axis=1)                        # (tb, 128)
        out_ref[...] = jnp.tanh(pooled).astype(out_ref.dtype)

    return kernel


# ----------------------------------------------------------------------------
# Wrapper: JAX glue (chunk / waypoint broadcast / flatten) + gridded pallas_call
# ----------------------------------------------------------------------------
def attention_forward(params, x, waypoints, n_section, block_b=None):
    if x.ndim == 1:
        x = x[None, :]
    if waypoints.ndim == 1:
        waypoints = waypoints[None, :]
    if waypoints.shape[0] != x.shape[0]:
        waypoints = jnp.broadcast_to(waypoints, (x.shape[0], waypoints.shape[1]))

    B, L = x.shape
    S = n_section
    sec = L // S
    Wp = waypoints.shape[1]
    D_in = sec + Wp

    # torch.chunk(dim=1) + cat((section, waypoints)) per section, flattened to
    # (B*S, D_in) so every dense layer is a single large 2-D MXU matmul.
    # TODO(synk): w_e1 could be split into section/waypoint parts to avoid the
    # S-fold waypoint duplication in the input DMA; minor at Wp=4.
    xin = jnp.concatenate(
        [x.reshape(B, S, sec),
         jnp.broadcast_to(waypoints[:, None, :], (B, S, Wp))],
        axis=-1,
    ).reshape(B * S, D_in).astype(jnp.bfloat16)

    w_e1, w_slab, b_slab = pack_params(params)

    # Batch-tile size: flattened M = block_b*S fills the 256-wide MXU; keep
    # >= 2 grid steps when possible (v7x has 2 TensorCores) and cap the tile
    # so activations stay well under the 32 MiB scoped VMEM on every chip.
    if block_b is None:
        block_b = min(B, 512)
        if B >= 16 and block_b == B:
            block_b = min(B, ((B + 1) // 2 + 7) // 8 * 8)
    block_b = max(1, min(block_b, B))
    if block_b < B:
        block_b = max(8, (block_b // 8) * 8)      # sublane-aligned output blocks
        if block_b >= B:
            block_b = B
    block_m = block_b * S
    grid = (pl.cdiv(B, block_b),)

    kernel = _make_kernel(block_b, S)

    out = pl.pallas_call(
        kernel,
        out_shape=jax.ShapeDtypeStruct((B, 128), jnp.float32),
        grid=grid,
        in_specs=[
            pl.BlockSpec((block_m, D_in), lambda i: (i, 0)),
            # weights/biases: constant block index -> DMA'd once, VMEM-resident
            pl.BlockSpec(w_e1.shape, lambda i: (0, 0)),
            pl.BlockSpec(w_slab.shape, lambda i: (0, 0)),
            pl.BlockSpec(b_slab.shape, lambda i: (0, 0)),
        ],
        out_specs=pl.BlockSpec((block_b, 128), lambda i: (i, 0)),
        compiler_params=pltpu.CompilerParams(
            dimension_semantics=("parallel",),
            vmem_limit_bytes=32 * 1024 * 1024,
        ),
    )(xin, w_e1, w_slab, b_slab)

    return out[:, :30]                            # drop lane padding


# ----------------------------------------------------------------------------
# Pure-JAX reference (same bf16-matmul / f32-accumulate numerics) for checking
# ----------------------------------------------------------------------------
def reference_forward(params, x, waypoints, n_section):
    if x.ndim == 1:
        x = x[None, :]
    if waypoints.ndim == 1:
        waypoints = waypoints[None, :]
    if waypoints.shape[0] != x.shape[0]:
        waypoints = jnp.broadcast_to(waypoints, (x.shape[0], waypoints.shape[1]))
    B, L = x.shape
    sec = L // n_section
    xin = jnp.concatenate(
        [x.reshape(B, n_section, sec),
         jnp.broadcast_to(waypoints[:, None, :], (B, n_section, waypoints.shape[1]))],
        axis=-1,
    )

    def dense(h, w, b, relu=True):
        y = jnp.einsum("bsd,dh->bsh", h.astype(jnp.bfloat16), w.astype(jnp.bfloat16),
                       preferred_element_type=jnp.float32) + b
        return jnp.maximum(y, 0.0) if relu else y

    (we1, be1), (we2, be2), (we3, be3), (wf1, bf1), (wf2, bf2), (wf3, bf3), \
        (ws1, bs1), (ws2, bs2), (ws3, bs3) = params
    a = dense(dense(dense(xin, we1, be1), we2, be2), we3, be3)
    f = dense(dense(dense(a, wf1, bf1), wf2, bf2), wf3, bf3, relu=False)
    s = dense(dense(dense(a, ws1, bs1), ws2, bs2), ws3, bs3, relu=False)
    attn = jax.nn.softmax(s, axis=1)
    return jnp.tanh(jnp.sum(f * attn, axis=1))


if __name__ == "__main__":
    key = jax.random.PRNGKey(0)

    # lidar-style input (B, 64) split into n_section=4 chunks of 16,
    # waypoints (B, 4) -> per-section MLP input_size = 16 + 4 = 20.
    B, L, W, n_section = 16, 64, 4, 4
    input_size = L // n_section + W

    k_x, k_w, k_p = jax.random.split(key, 3)
    x = jax.random.normal(k_x, (B, L), jnp.float32)
    waypoints = jax.random.normal(k_w, (B, W), jnp.float32)
    params = init_params(input_size, k_p)

    out = attention_forward(params, x, waypoints, n_section, block_b=8)  # 2 grid steps
    out = jax.block_until_ready(out)

    ref = reference_forward(params, x, waypoints, n_section)
    assert out.shape == (B, 30)
    max_err = float(jnp.max(jnp.abs(out - ref)))
    # tolerance covers bf16 matmul operands / accumulation-order differences
    assert jnp.allclose(out, ref, atol=2e-2, rtol=2e-2), f"mismatch vs reference: {max_err}"

    print("KERNEL_OK")
</pallas_src>

<mosaic_0001>
module attributes {stable_mosaic.version = 11 : i64} {
  func.func @kernel(%arg0: i32, %arg1: memref<32x20xbf16, #tpu.memory_space<vmem>>, %arg2: memref<20x256xbf16, #tpu.memory_space<vmem>>, %arg3: memref<256x1024xbf16, #tpu.memory_space<vmem>>, %arg4: memref<1x1280xf32, #tpu.memory_space<vmem>>, %arg5: memref<8x128xf32, #tpu.memory_space<vmem>>) attributes {dimension_semantics = [#tpu.dimension_semantics<parallel>], iteration_bounds = array<i64: 2>, scalar_prefetch = 0 : i64, scratch_operands = 0 : i64, tpu.core_type = #tpu.core_type<tc>, window_params = [{transform_indices = @transform_0, window_bounds = array<i64: 32, 20>}, {pipeline_mode = #tpu.pipeline_mode<synchronous>, transform_indices = @transform_1, window_bounds = array<i64: 20, 256>}, {pipeline_mode = #tpu.pipeline_mode<synchronous>, transform_indices = @transform_2, window_bounds = array<i64: 256, 1024>}, {pipeline_mode = #tpu.pipeline_mode<synchronous>, transform_indices = @transform_3, window_bounds = array<i64: 1, 1280>}, {transform_indices = @transform_4, window_bounds = array<i64: 8, 128>}]} {
    %c0 = arith.constant 0 : index
    %c0_0 = arith.constant 0 : index
    %0 = vector.load %arg1[%c0, %c0_0] : memref<32x20xbf16, #tpu.memory_space<vmem>>, vector<32x20xbf16>
    %c0_1 = arith.constant 0 : index
    %c0_2 = arith.constant 0 : index
    %1 = vector.load %arg2[%c0_1, %c0_2] : memref<20x256xbf16, #tpu.memory_space<vmem>>, vector<20x256xbf16>
    %c0_3 = arith.constant 0 : index
    %c0_4 = arith.constant 0 : index
    %2 = vector.load %arg4[%c0_3, %c0_4] : memref<1x1280xf32, #tpu.memory_space<vmem>>, vector<1x256xf32>
    %cst = arith.constant dense<0.000000e+00> : vector<32x256xf32>
    %3 = tpu.matmul %0, %1, %cst {dimension_numbers = #tpu.dot_dimension_numbers<[1], [0], [0], [1], [0, 0, 1, 1], [], []>} : vector<32x20xbf16>, vector<20x256xbf16>, vector<32x256xf32> -> vector<32x256xf32>
    %4 = vector.broadcast %2 : vector<1x256xf32> to vector<32x256xf32>
    %5 = arith.addf %3, %4 : vector<32x256xf32>
    %cst_5 = arith.constant 0.000000e+00 : f32
    %6 = vector.broadcast %cst_5 : f32 to vector<32x256xf32>
    %7 = arith.maximumf %5, %6 : vector<32x256xf32>
    %8 = arith.truncf %7 : vector<32x256xf32> to vector<32x256xbf16>
    %c0_6 = arith.constant 0 : index
    %c0_7 = arith.constant 0 : index
    %9 = vector.load %arg3[%c0_6, %c0_7] : memref<256x1024xbf16, #tpu.memory_space<vmem>>, vector<256x128xbf16>
    %c0_8 = arith.constant 0 : index
    %c256 = arith.constant 256 : index
    %10 = vector.load %arg4[%c0_8, %c256] : memref<1x1280xf32, #tpu.memory_space<vmem>>, vector<1x128xf32>
    %cst_9 = arith.constant dense<0.000000e+00> : vector<32x128xf32>
    %11 = tpu.matmul %8, %9, %cst_9 {dimension_numbers = #tpu.dot_dimension_numbers<[1], [0], [0], [1], [0, 0, 1, 1], [], []>} : vector<32x256xbf16>, vector<256x128xbf16>, vector<32x128xf32> -> vector<32x128xf32>
    %12 = vector.broadcast %10 : vector<1x128xf32> to vector<32x128xf32>
    %13 = arith.addf %11, %12 : vector<32x128xf32>
    %cst_10 = arith.constant 0.000000e+00 : f32
    %14 = vector.broadcast %cst_10 : f32 to vector<32x128xf32>
    %15 = arith.maximumf %13, %14 : vector<32x128xf32>
    %16 = arith.truncf %15 : vector<32x128xf32> to vector<32x128xbf16>
    %c0_11 = arith.constant 0 : index
    %c128 = arith.constant 128 : index
    %17 = vector.load %arg3[%c0_11, %c128] : memref<256x1024xbf16, #tpu.memory_space<vmem>>, vector<128x128xbf16>
    %c0_12 = arith.constant 0 : index
    %c384 = arith.constant 384 : index
    %18 = vector.load %arg4[%c0_12, %c384] : memref<1x1280xf32, #tpu.memory_space<vmem>>, vector<1x128xf32>
    %cst_13 = arith.constant dense<0.000000e+00> : vector<32x128xf32>
    %19 = tpu.matmul %16, %17, %cst_13 {dimension_numbers = #tpu.dot_dimension_numbers<[1], [0], [0], [1], [0, 0, 1, 1], [], []>} : vector<32x128xbf16>, vector<128x128xbf16>, vector<32x128xf32> -> vector<32x128xf32>
    %20 = vector.broadcast %18 : vector<1x128xf32> to vector<32x128xf32>
    %21 = arith.addf %19, %20 : vector<32x128xf32>
    %cst_14 = arith.constant 0.000000e+00 : f32
    %22 = vector.broadcast %cst_14 : f32 to vector<32x128xf32>
    %23 = arith.maximumf %21, %22 : vector<32x128xf32>
    %24 = arith.truncf %23 : vector<32x128xf32> to vector<32x128xbf16>
    %c0_15 = arith.constant 0 : index
    %c256_16 = arith.constant 256 : index
    %25 = vector.load %arg3[%c0_15, %c256_16] : memref<256x1024xbf16, #tpu.memory_space<vmem>>, vector<128x256xbf16>
    %c0_17 = arith.constant 0 : index
    %c512 = arith.constant 512 : index
    %26 = vector.load %arg4[%c0_17, %c512] : memref<1x1280xf32, #tpu.memory_space<vmem>>, vector<1x256xf32>
    %cst_18 = arith.constant dense<0.000000e+00> : vector<32x256xf32>
    %27 = tpu.matmul %24, %25, %cst_18 {dimension_numbers = #tpu.dot_dimension_numbers<[1], [0], [0], [1], [0, 0, 1, 1], [], []>} : vector<32x128xbf16>, vector<128x256xbf16>, vector<32x256xf32> -> vector<32x256xf32>
    %28 = vector.broadcast %26 : vector<1x256xf32> to vector<32x256xf32>
    %29 = arith.addf %27, %28 : vector<32x256xf32>
    %cst_19 = arith.constant 0.000000e+00 : f32
    %30 = vector.broadcast %cst_19 : f32 to vector<32x256xf32>
    %31 = arith.maximumf %29, %30 : vector<32x256xf32>
    %32 = arith.truncf %31 : vector<32x256xf32> to vector<32x256xbf16>
    %c0_20 = arith.constant 0 : index
    %c512_21 = arith.constant 512 : index
    %33 = vector.load %arg3[%c0_20, %c512_21] : memref<256x1024xbf16, #tpu.memory_space<vmem>>, vector<256x256xbf16>
    %c0_22 = arith.constant 0 : index
    %c768 = arith.constant 768 : index
    %34 = vector.load %arg4[%c0_22, %c768] : memref<1x1280xf32, #tpu.memory_space<vmem>>, vector<1x256xf32>
    %cst_23 = arith.constant dense<0.000000e+00> : vector<32x256xf32>
    %35 = tpu.matmul %32, %33, %cst_23 {dimension_numbers = #tpu.dot_dimension_numbers<[1], [0], [0], [1], [0, 0, 1, 1], [], []>} : vector<32x256xbf16>, vector<256x256xbf16>, vector<32x256xf32> -> vector<32x256xf32>
    %36 = vector.broadcast %34 : vector<1x256xf32> to vector<32x256xf32>
    %37 = arith.addf %35, %36 : vector<32x256xf32>
    %cst_24 = arith.constant 0.000000e+00 : f32
    %38 = vector.broadcast %cst_24 : f32 to vector<32x256xf32>
    %39 = arith.maximumf %37, %38 : vector<32x256xf32>
    %40 = arith.truncf %39 : vector<32x256xf32> to vector<32x256xbf16>
    %c0_25 = arith.constant 0 : index
    %c768_26 = arith.constant 768 : index
    %41 = vector.load %arg3[%c0_25, %c768_26] : memref<256x1024xbf16, #tpu.memory_space<vmem>>, vector<256x256xbf16>
    %c0_27 = arith.constant 0 : index
    %c1024 = arith.constant 1024 : index
    %42 = vector.load %arg4[%c0_27, %c1024] : memref<1x1280xf32, #tpu.memory_space<vmem>>, vector<1x256xf32>
    %cst_28 = arith.constant dense<0.000000e+00> : vector<32x256xf32>
    %43 = tpu.matmul %40, %41, %cst_28 {dimension_numbers = #tpu.dot_dimension_numbers<[1], [0], [0], [1], [0, 0, 1, 1], [], []>} : vector<32x256xbf16>, vector<256x256xbf16>, vector<32x256xf32> -> vector<32x256xf32>
    %44 = vector.broadcast %42 : vector<1x256xf32> to vector<32x256xf32>
    %45 = arith.addf %43, %44 : vector<32x256xf32>
    %46 = vector.shape_cast %45 : vector<32x256xf32> to vector<8x4x256xf32>
    %47 = vector.extract_strided_slice %46 {offsets = [0, 0, 0], sizes = [8, 4, 128], strides = [1, 1, 1]} : vector<8x4x256xf32> to vector<8x4x128xf32>
    %48 = vector.extract_strided_slice %46 {offsets = [0, 0, 128], sizes = [8, 4, 1], strides = [1, 1, 1]} : vector<8x4x256xf32> to vector<8x4x1xf32>
    %cst_29 = arith.constant dense<0xFF800000> : vector<8x1xf32>
    %49 = vector.multi_reduction <maximumf>, %48, %cst_29 [1] : vector<8x4x1xf32> to vector<8x1xf32>
    %50 = vector.shape_cast %49 : vector<8x1xf32> to vector<8x1x1xf32>
    %51 = vector.broadcast %50 : vector<8x1x1xf32> to vector<8x4x1xf32>
    %52 = arith.subf %48, %51 : vector<8x4x1xf32>
    %53 = math.exp %52 : vector<8x4x1xf32>
    %cst_30 = arith.constant dense<0.000000e+00> : vector<8x1xf32>
    %54 = vector.multi_reduction <add>, %53, %cst_30 [1] : vector<8x4x1xf32> to vector<8x1xf32>
    %55 = vector.shape_cast %54 : vector<8x1xf32> to vector<8x1x1xf32>
    %56 = vector.broadcast %55 : vector<8x1x1xf32> to vector<8x4x1xf32>
    %57 = arith.divf %53, %56 : vector<8x4x1xf32>
    %58 = vector.broadcast %57 : vector<8x4x1xf32> to vector<8x4x128xf32>
    %59 = arith.mulf %47, %58 : vector<8x4x128xf32>
    %cst_31 = arith.constant dense<0.000000e+00> : vector<8x128xf32>
    %60 = vector.multi_reduction <add>, %59, %cst_31 [1] : vector<8x4x128xf32> to vector<8x128xf32>
    %61 = math.tanh %60 : vector<8x128xf32>
    %c0_32 = arith.constant 0 : index
    %c0_33 = arith.constant 0 : index
    %62 = vector.load %arg5[%c0_32, %c0_33] : memref<8x128xf32, #tpu.memory_space<vmem>>, vector<8x128xf32>
    tpu.vector_store %arg5[%c0_32, %c0_33], %61 {strides = array<i32>} : memref<8x128xf32, #tpu.memory_space<vmem>>, vector<8x128xf32>,
    return
  }
  func.func @transform_0(%arg0: i32) -> (i32, i32) {
    %c0_i32 = arith.constant 0 : i32
    %c0_i32_0 = arith.constant 0 : i32
    return %arg0, %c0_i32 : i32, i32
  }
  func.func @transform_1(%arg0: i32) -> (i32, i32) {
    %c0_i32 = arith.constant 0 : i32
    %c0_i32_0 = arith.constant 0 : i32
    %c0_i32_1 = arith.constant 0 : i32
    return %c0_i32, %c0_i32_0 : i32, i32
  }
  func.func @transform_2(%arg0: i32) -> (i32, i32) {
    %c0_i32 = arith.constant 0 : i32
    %c0_i32_0 = arith.constant 0 : i32
    %c0_i32_1 = arith.constant 0 : i32
    return %c0_i32, %c0_i32_0 : i32, i32
  }
  func.func @transform_3(%arg0: i32) -> (i32, i32) {
    %c0_i32 = arith.constant 0 : i32
    %c0_i32_0 = arith.constant 0 : i32
    %c0_i32_1 = arith.constant 0 : i32
    return %c0_i32, %c0_i32_0 : i32, i32
  }
  func.func @transform_4(%arg0: i32) -> (i32, i32) {
    %c0_i32 = arith.constant 0 : i32
    %c0_i32_0 = arith.constant 0 : i32
    return %arg0, %c0_i32 : i32, i32
  }
}

</mosaic_0001>

<bundles_post_ra>
// kernel: tpu_custom_call.1
= control target key start
LH: loop header
LB: loop body
LE: loop exit
PB: predicated region body
PF: predicated region fallthrough
CT: control target
= control target key end

     0   :  { %9 = vsyncpa [#allocation3], 0  ;;  %s3028_s0 = inlined_call_operand.vmem [shape: bf16[64,20], index: 0, kind: input, shape index: {}]   ;;  %s3029_s1 = inlined_call_operand.vmem [shape: bf16[20,256], index: 1, kind: input, shape index: {}]   ;;  %s3030_s2 = inlined_call_operand.hbm [shape: bf16[256,1024], index: 2, kind: input, shape index: {}]   ;;  %s3031_s3 = inlined_call_operand.vmem [shape: f32[1,1280], index: 3, kind: input, shape index: {}]   ;;  %s3032_s4 = inlined_call_operand.hbm [shape: f32[16,128], index: 4, kind: output, shape index: {}]  }
   0x1   :  { %10 = vsyncpa [#allocation4], 0 }
   0x2   :  { %12 = vsyncpa [#allocation4 + $0x1], 0  ;;  %s2687_s15 = smov 0   ;;  %s2689_s16 = smov 0  }
   0x3   :  { %s2691_s17 = smov 0   ;;  %s2693_s18 = smov 0  }
   0x4 LB: > { %s2708_s19 = sadd.s32 4294967295, %s2655_s18   ;;  %s1887_s20 = sadd.s32 4294967294, %s2655_s18   ;;  %s2655_s18 = sphi %s2693_s18, %s3046_s18   ;;  %s2651_s17 = sphi %s2691_s17, %s3045_s17   ;;  %s2647_s16 = sphi %s2689_s16, %s3044_s16   ;;  %s2643_s15 = sphi %s2687_s15, %s3043_s15  }
   0x5   : > { %s2712_s21 = sadd.s32 1, %s2655_s18   ;;  %s114_s22 = sadd.s32 1, %s2651_s17 }
   0x6   : > { %s111_s23 = ssub.s32 %s2655_s18, %s2712_s21  ;;  %p124_p0 = scmp.ne.s32.totalorder %s2651_s17, %s2647_s16 }
   0x7   : > { %p112_p1 = scmp.eq.s32.totalorder %s111_s23, 0  ;;  %p125_p2 = scmp.eq.s32.totalorder %s2708_s19, 1 }
   0x8   : > { %p130_p3 = scmp.ne.s32.totalorder %s2647_s16, %s2643_s15  ;;  %p131_p4 = scmp.eq.s32.totalorder %s1887_s20, 1 }
   0x9   : > { %s2723_s24 = scalar_select %p112_p1, %s2651_s17, %s114_s22  }
   0xa   : > { %p2725_p5 = por %p125_p2, %p124_p0  ;;  %p2729_p6 = por %p131_p4, %p130_p3 }
   0xb   : > { %p1888_p7 = scmp.ge.s32.totalorder %s2655_s18, 1  ;;  %p138_p8 = scmp.lt.s32.totalorder %s2655_s18, 3 }
   0xc   : > { %p2466_p9 = scmp.eq.s32.totalorder %s2708_s19, 0  ;;  %s152_s29 = sshll.u32 %s3030_s2, 4  ;;  %s153_s29 = int_to_ptr.hbm [resolvable:$true] %s152_s29 }
   0xd   : > { %p139_p10 = pnand %p1888_p7, %p138_p8  ;;  %s2657_s30 = smov [#allocation2]  }
   0xe   : > { %s154_s5 = sshll.u32 %s2657_s30, 4  ;;  %s2658_s6 = smov 512   ;;  %s155_s5 = int_to_ptr.vmem [resolvable:$true] %s154_s5 }
   0xf   : > { %p2458_p11 = pneg %p139_p10  ;;  %s2659_s7 = smov 32  }
  0x10   : > { %182 = sbr.rel (%p139_p10) target bundleno = 1148 (0x47c), region = 36 }
  0x11   : > { %p2459_p12 = pnand %p2466_p9, %p2458_p11 }
  0x13   : > { %2461 = dma.hbm_to_vmem [thread:$0]  (!%p2459_p12), %s153_s29, 16384, %s155_s5, [#allocation3], %s2658_s6, %s2658_s6, %s2659_s7  }
  0x15   : > { %2634 = dma.done.wait (%p2466_p9), [#allocation3], 16384  }
  0x16   : > { %2636 = vsyncadd (%p2466_p9), [#allocation3], 4294950912  ;;  %s1894_s8 = sshll.u32 %s2708_s19, 2  ;;  %v222_v0 = vld [vmem:[%s3029_s1 + $0x10] sm:$0x33]  ;;  %vm261_vm0 = vcmask 1041408  }
  0x17   : > { %p210_p13 = scmp.lt.s32.totalorder %s1894_s8, 7  ;;  %v246_v1 = vunpack.c.l.b16 %v222_v0  ;;  %v247_v2 = vunpack.c.h.b16 %v222_v0  ;;  %v1906_v3 = vld [vmem:[%s3029_s1] sm:$0xf]  ;;  %v2339_v4 = vld [vmem:[%s3029_s1 + $0x4] sm:$0xf0]  ;;  %vm254_vm1 = vcmask 162816  }
  0x18   : > { %v2338_v5 = vld [vmem:[%s3029_s1 + $0x4] sm:$0xf]  ;;  %v1908_v6 = vld [vmem:[%s3029_s1 + $0x8] sm:$0xf0]  ;;  %v1946_v7 = vld [vmem:[#allocation2 + $0x1c0] sm:$0xf]  ;;  %v1907_v22 = vor.u32 %v2339_v4, %v1906_v3 }
  0x19   : > { %s3048_s8 = smov (!%p210_p13, %s1894_s8), 7  ;;  %v2347_v8 = vld [vmem:[#allocation2 + $0x1dc] sm:$0xf0]  ;;  %v250_v9 = vpack.c.b16 %v246_v1, %v246_v1  ;;  %v251_v10 = vpack.c.b16 %v247_v2, %v247_v2  ;;  %v1911_v23 = vor.u32 %v2338_v5, %v1908_v6  ;;  %v2010_v63 = vld [vmem:[#allocation2 + $0x1c4] sm:$0xf]  ;;  %vm1311_vm2 = vcmask 1043456  }
  0x1a   : > { %s1895_s11 = sshll.u32 %s3048_s8, 2  ;;  %v1947_v11 = vor.u32 %v2347_v8, %v1946_v7  ;;  %v1978_v12 = vld [vmem:[#allocation2 + $0x3c0] sm:$0xf]  ;;  %v2363_v0 = vld [vmem:[#allocation2 + $0x1e0] sm:$0xf0]  ;;  %vm1359_vm3 = vcmask 3072  }
  0x1b   : > { %v2355_v13 = vld [vmem:[#allocation2 + $0x3dc] sm:$0xf0]  ;;  %v263_v19 = vsel %vm261_vm0, %v250_v9, 0  ;;  %v266_v20 = vsel %vm261_vm0, %v251_v10, 0  ;;  %s213_s5 = scalar_lea.vmem %s3028_s0, %s1895_s11  ;;  %v2006_v1 = vld [vmem:[#allocation2 + $0x184] sm:$0xf]  ;;  %v2011_v5 = vor.u32 %v2363_v0, %v2010_v63 }
  0x1c   : > { %v1942_v14 = vld [vmem:[#allocation2 + $0x180] sm:$0xf]  ;;  %v1979_v15 = vor.u32 %v2355_v13, %v1978_v12  ;;  %450 = vmatpush.bf16.msra.mxu2 %v1947_v11  ;;  %274 = vmatpush.bf16.msra.mxu0 %v263_v19  ;;  %v2336_v29 = vld [vmem:[%s213_s5] sm:$0xff]  ;;  %v2362_v6 = vld [vmem:[#allocation2 + $0x1a0] sm:$0xf0]  ;;  %s206_s27 = sand.u32 1, %s2647_s16  }
  0x1d   : > { %v2346_v16 = vld [vmem:[#allocation2 + $0x19c] sm:$0xf0]  ;;  %293 = vmatpush.bf16.msra.mxu1 %v266_v20  ;;  %v223_v2 = vld [vmem:[%s3031_s3] sm:$0x3]  ;;  %v2007_v7 = vor.u32 %v2362_v6, %v2006_v1  ;;  %v2002_v10 = vld [vmem:[#allocation2 + $0x144] sm:$0xf] }
  0x1e   : > { %v1974_v17 = vld [vmem:[#allocation2 + $0x380] sm:$0xf]  ;;  %v1943_v21 = vor.u32 %v2346_v16, %v1942_v14  ;;  %469 = vmatpush.bf16.msra.mxu3 %v1979_v15  ;;  %v225_v8 = vperm.slane %v223_v2, 0  ;;  %v226_v9 = vperm.slane %v223_v2, 1  ;;  %v2361_v11 = vld [vmem:[#allocation2 + $0x160] sm:$0xf0] }
  0x1f   : > { %v2354_v18 = vld [vmem:[#allocation2 + $0x39c] sm:$0xf0]  ;;  %v2003_v12 = vor.u32 %v2361_v11, %v2002_v10  ;;  %v1998_v15 = vld [vmem:[#allocation2 + $0x104] sm:$0xf]  ;;  %v2377_v63 = vld [vmem:[#allocation2 + $0x1a4] sm:$0xf0] }
  0x20   : > { %v1975_v24 = vor.u32 %v2354_v18, %v1974_v17  ;;  %v1938_v25 = vld [vmem:[#allocation2 + $0x140] sm:$0xf]  ;;  %451 = vmatpush.bf16.msra.mxu2 %v1943_v21  ;;  %275 = vmatpush.bf16.msra.mxu0 %v1907_v22  ;;  %v2360_v16 = vld [vmem:[#allocation2 + $0x120] sm:$0xf0]  ;;  %v2376_v1 = vld [vmem:[#allocation2 + $0x18c] sm:$0xf] }
  0x21   : > { %v2345_v26 = vld [vmem:[#allocation2 + $0x15c] sm:$0xf0]  ;;  %294 = vmatpush.bf16.msra.mxu1 %v1911_v23  ;;  %v1999_v21 = vor.u32 %v2360_v16, %v1998_v15  ;;  %v2064_v2 = vld [vmem:[#allocation2 + $0x1a8] sm:$0xf0]  ;;  %v2054_v6 = vld [vmem:[#allocation2 + $0x148] sm:$0xf] }
  0x22   : > { %v1970_v27 = vld [vmem:[#allocation2 + $0x340] sm:$0xf]  ;;  %v1939_v30 = vor.u32 %v2345_v26, %v1938_v25  ;;  %470 = vmatpush.bf16.msra.mxu3 %v1975_v24  ;;  %v2046_v16 = vld [vmem:[#allocation2 + $0x108] sm:$0xf]  ;;  %s1893_s28 = sshll.u32 %s206_s27, 3  ;;  %s2333_s29 = sshll.u32 %s2708_s19, 3 }
  0x23   : > { %v2353_v28 = vld [vmem:[#allocation2 + $0x35c] sm:$0xf0]  ;;  %1912 = vmatmul.msk.bf16.vlgmr.msra.gmra.mxu0 %vm254_vm1, %v2336_v29  ;;  %s1811_s6 = scalar_lea.hbm %s3032_s4, %s2333_s29  ;;  %s208_s7 = scalar_lea.vmem [#allocation5], %s1893_s28 }
  0x24   : > { %v1971_v31 = vor.u32 %v2353_v28, %v1970_v27  ;;  %v1934_v32 = vld [vmem:[#allocation2 + $0x100] sm:$0xf]  ;;  %1914 = vmatmul.msk.bf16.vlgmr.msra.gmra.mxu1 %vm254_vm1, %v2336_v29  ;;  %452 = vmatpush.bf16.msra.mxu2 %v1939_v30  ;;  %s1813_s8 = sshll.u32 %s208_s7, 4  ;;  %s1815_s9 = sshll.u32 %s1811_s6, 4  ;;  %s1814_s8 = int_to_ptr.vmem [resolvable:$true] %s1813_s8  ;;  %s1816_s9 = int_to_ptr.hbm [resolvable:$true] %s1815_s9 }
  0x25   : > { %v2344_v33 = vld [vmem:[#allocation2 + $0x11c] sm:$0xf0]  ;;  %562 = vmatpush.bf16.msrb.mxu0 %v2011_v5  ;;  %v2067_v5 = vor.u32 %v2376_v1, %v2064_v2  ;;  %v2136_v2 = vld [vmem:[#allocation2 + $0x1f0] sm:$0xf0]  ;;  %s1801_s19 = scalar_lea.sflag [#allocation4], %s206_s27  ;;  %s2603_s10 = sshra.s32 %s1816_s9, 4  ;;  %s2604_s10 = int_to_ptr.hbm [resolvable:$true] %s2603_s10 }
  0x26   : > { %v1966_v34 = vld [vmem:[#allocation2 + $0x300] sm:$0xf]  ;;  %v1935_v36 = vor.u32 %v2344_v33, %v1934_v32  ;;  %471 = vmatpush.bf16.msra.mxu3 %v1971_v31  ;;  %s2605_s11 = scalar_lea.hbm %s2604_s10, 8  ;;  %s2609_s14 = scalar_lea.hbm %s3032_s4, 16 }
  0x27   : > { %v2352_v35 = vld [vmem:[#allocation2 + $0x31c] sm:$0xf0]  ;;  %p2606_p0 = scmp.ne.s32.totalorder %s2604_s10, %s2605_s11  ;;  %p2610_p3 = scmp.lt.s32.totalorder %s2604_s10, %s3032_s4 }
  0x28   : > { %v1967_v37 = vor.u32 %v2352_v35, %v1966_v34  ;;  %453 = vmatpush.bf16.msra.mxu2 %v1935_v36  ;;  %v2337_v38 = vld [vmem:[%s213_s5 + $0x8] sm:$0xff]  ;;  %p2611_p4 = scmp.lt.s32.totalorder %s2609_s14, %s2605_s11 }
  0x29   : > { %v1930_v39 = vld [vmem:[#allocation2 + $0xc0] sm:$0xf]  ;;  %563 = vmatpush.bf16.msrb.mxu0 %v2007_v7  ;;  %v2375_v7 = vld [vmem:[#allocation2 + $0x164] sm:$0xf0]  ;;  %p2607_p1 = pnand %p2606_p0, %p2725_p5 }
  0x2a   : > { %472 = vmatpush.bf16.msra.mxu3 %v1967_v37  ;;  %v2343_v40 = vld [vmem:[#allocation2 + $0xdc] sm:$0xf0]  ;;  %p2612_p7 = por %p2611_p4, %p2610_p3 }
  0x2b   : > { %v1962_v41 = vld [vmem:[#allocation2 + $0x2c0] sm:$0xf]  ;;  %v1931_v42 = vor.u32 %v2343_v40, %v1930_v39  ;;  %p2608_p2 = pneg %p2607_p1 }
  0x2c   : > { %v2351_v43 = vld [vmem:[#allocation2 + $0x2dc] sm:$0xf0] }
  0x2d   : > { %v1963_v44 = vor.u32 %v2351_v43, %v1962_v41  ;;  %454 = vmatpush.bf16.msra.mxu2 %v1931_v42  ;;  %v1926_v45 = vld [vmem:[#allocation2 + $0x80] sm:$0xf]  ;;  %564 = vmatpush.bf16.msrb.mxu0 %v2003_v12  ;;  %v1994_v42 = vld [vmem:[#allocation2 + $0xc4] sm:$0xf]  ;;  %v2055_v12 = vor.u32 %v2375_v7, %v2054_v6  ;;  %v2392_v6 = vld [vmem:[#allocation2 + $0x194] sm:$0xf]  ;;  %p2613_p8 = pnand %p2612_p7, %p2608_p2 }
  0x2e   : > { %v2342_v46 = vld [vmem:[#allocation2 + $0x9c] sm:$0xf0]  ;;  %v2359_v43 = vld [vmem:[#allocation2 + $0xe0] sm:$0xf0]  ;;  %v2128_v7 = vld [vmem:[#allocation2 + $0x1b0] sm:$0xf0] }
  0x2f   : > { %473 = vmatpush.bf16.msra.mxu3 %v1963_v44  ;;  %v1927_v47 = vor.u32 %v2342_v46, %v1926_v45  ;;  %v1958_v48 = vld [vmem:[#allocation2 + $0x280] sm:$0xf]  ;;  %v1995_v44 = vor.u32 %v2359_v43, %v1994_v42  ;;  %v1990_v45 = vld [vmem:[#allocation2 + $0x84] sm:$0xf]  ;;  %v2030_v43 = vld [vmem:[#allocation2 + $0x88] sm:$0xf] }
  0x30   : > { %v2350_v49 = vld [vmem:[#allocation2 + $0x29c] sm:$0xf0]  ;;  %v2358_v46 = vld [vmem:[#allocation2 + $0xa0] sm:$0xf0] }
  0x31   : > { %v1959_v50 = vor.u32 %v2350_v49, %v1958_v48  ;;  %455 = vmatpush.bf16.msra.mxu2 %v1927_v47  ;;  %v1922_v51 = vld [vmem:[#allocation2 + $0x40] sm:$0xf]  ;;  %565 = vmatpush.bf16.msrb.mxu0 %v1999_v21  ;;  %v1991_v47 = vor.u32 %v2358_v46, %v1990_v45  ;;  %v1986_v48 = vld [vmem:[#allocation2 + $0x44] sm:$0xf]  ;;  %v2368_v45 = vld [vmem:[#allocation2 + $0x8c] sm:$0xf] }
  0x32   : > { %v2341_v52 = vld [vmem:[#allocation2 + $0x5c] sm:$0xf0]  ;;  %v2357_v49 = vld [vmem:[#allocation2 + $0x60] sm:$0xf0] }
  0x33   : > { %1913 = vmatmul.msk.bf16.gmra.mxu0 %vm254_vm1, %v2337_v38  ;;  %474 = vmatpush.bf16.msra.mxu3 %v1959_v50  ;;  %v1954_v53 = vld [vmem:[#allocation2 + $0x240] sm:$0xf]  ;;  %v1923_v54 = vor.u32 %v2341_v52, %v1922_v51  ;;  %v1987_v50 = vor.u32 %v2357_v49, %v1986_v48  ;;  %v1982_v51 = vld [vmem:[#allocation2 + $0x4] sm:$0xf]  ;;  %v2022_v49 = vld [vmem:[#allocation2 + $0x48] sm:$0xf] }
  0x34   : > { %1915 = vmatmul.msk.bf16.gmra.mxu1 %vm254_vm1, %v2337_v38  ;;  %v2349_v55 = vld [vmem:[#allocation2 + $0x25c] sm:$0xf0]  ;;  %v2356_v52 = vld [vmem:[#allocation2 + $0x20] sm:$0xf0] }
  0x35   : > { %v1955_v56 = vor.u32 %v2349_v55, %v1954_v53  ;;  %456 = vmatpush.bf16.msra.mxu2 %v1923_v54  ;;  %v1918_v57 = vld [vmem:[#allocation2] sm:$0xf]  ;;  %566 = vmatpush.bf16.msrb.mxu0 %v1995_v44  ;;  %v1983_v53 = vor.u32 %v2356_v52, %v1982_v51  ;;  %v2509_v54 = vld [vmem:[%s3031_s3 + $0x2] ss:$0 sm:$0xff]  ;;  %v2369_v44 = vld [vmem:[#allocation2 + $0xa4] sm:$0xf0] }
  0x36   : > { %v2340_v58 = vld [vmem:[#allocation2 + $0x1c] sm:$0xf0]  ;;  %v2031_v46 = vor.u32 %v2369_v44, %v2030_v43  ;;  %v2366_v52 = vld [vmem:[#allocation2 + $0x4c] sm:$0xf] }
  0x37   : > { %475 = vmatpush.bf16.msra.mxu3 %v1955_v56  ;;  %v1950_v59 = vld [vmem:[#allocation2 + $0x200] sm:$0xf]  ;;  %v1919_v60 = vor.u32 %v2340_v58, %v1918_v57  ;;  %v2070_v57 = vld [vmem:[#allocation2 + $0x1c8] sm:$0xf] }
  0x38   : > { %v2348_v61 = vld [vmem:[#allocation2 + $0x21c] sm:$0xf0]  ;;  %v2379_v58 = vld [vmem:[#allocation2 + $0x1e4] sm:$0xf0] }
  0x39   : > { %v1951_v62 = vor.u32 %v2348_v61, %v1950_v59  ;;  %457 = vmatpush.bf16.msra.mxu2 %v1919_v60  ;;  %567 = vmatpush.bf16.msrb.mxu0 %v1991_v47  ;;  %v2378_v59 = vld [vmem:[#allocation2 + $0x1cc] sm:$0xf]  ;;  %v2071_v60 = vor.u32 %v2379_v58, %v2070_v57 }
  0x3a   : > { %v2072_v61 = vld [vmem:[#allocation2 + $0x1e8] sm:$0xf0] }
  0x3b   : > { %476 = vmatpush.bf16.msra.mxu3 %v1951_v62  ;;  %v2062_v62 = vld [vmem:[#allocation2 + $0x188] sm:$0xf]  ;;  %v2075_v0 = vor.u32 %v2378_v59, %v2072_v61  ;;  %689 = vmatpush.bf16.msrb.mxu1 %v2071_v60  ;;  %v2032_v47 = vld [vmem:[#allocation2 + $0xa8] sm:$0xf0]  ;;  %v2134_v61 = vld [vmem:[#allocation2 + $0x1d0] sm:$0xf] }
  0x3c   : > { %v2035_v48 = vor.u32 %v2368_v45, %v2032_v47  ;;  %v2364_v57 = vld [vmem:[#allocation2 + $0xc] sm:$0xf]  ;;  %v2102_v45 = vld [vmem:[#allocation2 + $0xd0] sm:$0xf] }
  0x3d   : > { %568 = vmatpush.bf16.msrb.mxu0 %v1987_v50  ;;  %708 = vmatpush.bf16.msrb.mxu2 %v2075_v0  ;;  %v2367_v50 = vld [vmem:[#allocation2 + $0x64] sm:$0xf0]  ;;  %v2016_v59 = vld [vmem:[#allocation2 + $0x28] sm:$0xf0] }
  0x3e   : > { %v2023_v51 = vor.u32 %v2367_v50, %v2022_v49  ;;  %v2019_v60 = vor.u32 %v2364_v57, %v2016_v59  ;;  %v2386_v57 = vld [vmem:[#allocation2 + $0xd4] sm:$0xf] }
  0x41   : > { %569 = vmatpush.bf16.msrb.mxu0 %v1983_v53  ;;  %709 = vmatpush.bf16.msrb.mxu2 %v2067_v5  ;;  %v2024_v53 = vld [vmem:[#allocation2 + $0x68] sm:$0xf0] }
  0xa0   : > { %v277_v3 = vpop.f32.mrf.mxu0 }
  0xa1   : > { %v296_v4 = vpop.f32.mrf.mxu1  ;;  %v278_v13 = vadd.f32 %v277_v3, %v225_v8  ;;  %v2063_v3 = vor.u32 %v2377_v63, %v2062_v62  ;;  %v2395_v62 = vld [vmem:[#allocation2 + $0x1ec] sm:$0xf0]  ;;  %v2394_v63 = vld [vmem:[#allocation2 + $0x1d4] sm:$0xf] }
  0xa2   : > { %v297_v14 = vadd.f32 %v296_v4, %v226_v9  ;;  %v2135_v1 = vor.u32 %v2395_v62, %v2134_v61  ;;  %v2139_v5 = vor.u32 %v2394_v63, %v2136_v2  ;;  %v2405_v61 = vld [vmem:[#allocation2 + $0x32c] sm:$0xf0]  ;;  %v2404_v62 = vld [vmem:[#allocation2 + $0x314] sm:$0xf] }
  0xa3   : > { %v306_v22 = vmax.f32 %v278_v13, 0.0  ;;  %690 = vmatpush.bf16.msrb.mxu1 %v2063_v3  ;;  %v2126_v3 = vld [vmem:[#allocation2 + $0x190] sm:$0xf] }
  0xa4   : > { %v307_v23 = vmax.f32 %v297_v14, 0.0  ;;  %937 = vmatpush.bf16.msrb.mxu3 %v2135_v1  ;;  %v2094_v2 = vld [vmem:[#allocation2 + $0x90] sm:$0xf] }
  0xa7   : > { %691 = vmatpush.bf16.msrb.mxu1 %v2055_v12  ;;  %v2200_v12 = vld [vmem:[#allocation2 + $0x3f0] sm:$0xf0] }
  0xa8   : > { %v279_v17 = vpop.f32.mrf.mxu0 }
  0xa9   : > { %v298_v18 = vpop.f32.mrf.mxu1  ;;  %v280_v19 = vadd.f32 %v279_v17, %v225_v8  ;;  %v2373_v17 = vld [vmem:[#allocation2 + $0x124] sm:$0xf0] }
  0xaa   : > { %v299_v20 = vadd.f32 %v298_v18, %v226_v9  ;;  %v2372_v18 = vld [vmem:[#allocation2 + $0x10c] sm:$0xf]  ;;  %v2047_v21 = vor.u32 %v2373_v17, %v2046_v16  ;;  %v2118_v17 = vld [vmem:[#allocation2 + $0x150] sm:$0xf] }
  0xab   : > { %v308_v24 = vmax.f32 %v280_v19, 0.0  ;;  %v2048_v19 = vld [vmem:[#allocation2 + $0x128] sm:$0xf0] }
  0xac   : > { %v309_v25 = vmax.f32 %v299_v20, 0.0  ;;  %692 = vmatpush.bf16.msrb.mxu1 %v2047_v21  ;;  %v2190_v21 = vld [vmem:[#allocation2 + $0x390] sm:$0xf] }
  0xad   : > { %v314_v26 = vpack.c.bf16 %v308_v24, %v306_v22  ;;  %v2051_v24 = vor.u32 %v2372_v18, %v2048_v19  ;;  %v2391_v18 = vld [vmem:[#allocation2 + $0x16c] sm:$0xf0]  ;;  %v2390_v19 = vld [vmem:[#allocation2 + $0x154] sm:$0xf] }
  0xae   : > { %v315_v27 = vpack.c.bf16 %v309_v25, %v307_v23  ;;  %v2038_v25 = vld [vmem:[#allocation2 + $0xc8] sm:$0xf] }
  0xaf   : > { %458 = vmatmul.bf16.vlgmr.msra.gmra.mxu2 %v314_v26  ;;  %v2371_v26 = vld [vmem:[#allocation2 + $0xe4] sm:$0xf0] }
  0xb0   : > { %477 = vmatmul.bf16.vlgmr.msra.gmra.mxu3 %v315_v27  ;;  %v282_v28 = vpop.f32.mrf.mxu0 }
  0xb1   : > { %v301_v29 = vpop.f32.mrf.mxu1  ;;  %v283_v30 = vadd.f32 %v282_v28, %v225_v8 }
  0xb2   : > { %v302_v31 = vadd.f32 %v301_v29, %v226_v9 }
  0xb3   : > { %v310_v36 = vmax.f32 %v283_v30, 0.0  ;;  %v2039_v30 = vor.u32 %v2371_v26, %v2038_v25  ;;  %v2119_v25 = vor.u32 %v2391_v18, %v2118_v17  ;;  %v2088_v18 = vld [vmem:[#allocation2 + $0x70] sm:$0xf0] }
  0xb4   : > { %v311_v37 = vmax.f32 %v302_v31, 0.0 }
  0xb5   : > { %693 = vmatpush.bf16.msrb.mxu1 %v2039_v30 }
  0xb8   : > { %v284_v32 = vpop.f32.mrf.mxu0 }
  0xb9   : > { %v303_v33 = vpop.f32.mrf.mxu1  ;;  %v285_v34 = vadd.f32 %v284_v32, %v225_v8  ;;  %v2374_v8 = vld [vmem:[#allocation2 + $0x14c] sm:$0xf]  ;;  %694 = vmatpush.bf16.msrb.mxu1 %v2031_v46  ;;  %v2387_v46 = vld [vmem:[#allocation2 + $0xec] sm:$0xf0] }
  0xba   : > { %v304_v35 = vadd.f32 %v303_v33, %v226_v9  ;;  %v2056_v9 = vld [vmem:[#allocation2 + $0x168] sm:$0xf0]  ;;  %v2103_v49 = vor.u32 %v2387_v46, %v2102_v45 }
  0xbb   : > { %v312_v38 = vmax.f32 %v285_v34, 0.0  ;;  %v2059_v15 = vor.u32 %v2374_v8, %v2056_v9  ;;  %v2198_v8 = vld [vmem:[#allocation2 + $0x3d0] sm:$0xf] }
  0xbc   : > { %v313_v39 = vmax.f32 %v304_v35, 0.0 }
  0xbd   : > { %v316_v40 = vpack.c.bf16 %v312_v38, %v310_v36  ;;  %710 = vmatpush.bf16.msrb.mxu2 %v2059_v15  ;;  %695 = vmatpush.bf16.msrb.mxu1 %v2023_v51 }
  0xbe   : > { %v317_v41 = vpack.c.bf16 %v313_v39, %v311_v37 }
  0xbf   : > { %463 = vmatmul.bf16.gmra.mxu2 %v316_v40  ;;  %v2370_v40 = vld [vmem:[#allocation2 + $0xcc] sm:$0xf] }
  0xc0   : > { %482 = vmatmul.bf16.gmra.mxu3 %v317_v41  ;;  %v2040_v41 = vld [vmem:[#allocation2 + $0xe8] sm:$0xf0] }
  0xc1   : > { %711 = vmatpush.bf16.msrb.mxu2 %v2051_v24  ;;  %v2043_v42 = vor.u32 %v2370_v40, %v2040_v41  ;;  %v2192_v24 = vld [vmem:[#allocation2 + $0x3b0] sm:$0xf0] }
  0xc5   : > { %712 = vmatpush.bf16.msrb.mxu2 %v2043_v42 }
  0xc9   : > { %713 = vmatpush.bf16.msrb.mxu2 %v2035_v48 }
 0x132   : > { %v459_v55 = vpop.f32.mrf.mxu2 }
 0x133   : > { %v478_v56 = vpop.f32.mrf.mxu3  ;;  %v460_v4 = vadd.f32 %v2509_v54, %v459_v55  ;;  %v2014_v55 = vld [vmem:[#allocation2 + $0x8] sm:$0xf] }
 0x135   : > { %v479_v13 = vadd.f32 %v478_v56, %v460_v4  ;;  %v2365_v56 = vld [vmem:[#allocation2 + $0x24] sm:$0xf0]  ;;  %v2393_v4 = vld [vmem:[#allocation2 + $0x1ac] sm:$0xf0] }
 0x136   : > { %v2015_v58 = vor.u32 %v2365_v56, %v2014_v55  ;;  %v2127_v9 = vor.u32 %v2393_v4, %v2126_v3  ;;  %v2385_v3 = vld [vmem:[#allocation2 + $0xac] sm:$0xf0]  ;;  %v2384_v4 = vld [vmem:[#allocation2 + $0x94] sm:$0xf] }
 0x137   : > { %v488_v22 = vmax.f32 %v479_v13, 0.0  ;;  %v2510_v13 = vld [vmem:[%s3031_s3 + $0x3] ss:$0 sm:$0xff] }
 0x138   : > { %696 = vmatpush.bf16.msrb.mxu1 %v2015_v58  ;;  %938 = vmatpush.bf16.msrb.mxu3 %v2127_v9  ;;  %v2104_v58 = vld [vmem:[#allocation2 + $0xf0] sm:$0xf0]  ;;  %v2403_v9 = vld [vmem:[#allocation2 + $0x2ec] sm:$0xf0] }
 0x139   : > { %v2107_v59 = vor.u32 %v2386_v57, %v2104_v58  ;;  %v2326_v57 = vld [vmem:[#allocation2 + $0x3d8] sm:$0xf] }
 0x13a   : > { %v461_v10 = vpop.f32.mrf.mxu2  ;;  %v2443_v58 = vld [vmem:[#allocation2 + $0x3f4] sm:$0xf0] }
 0x13b   : > { %v480_v11 = vpop.f32.mrf.mxu3  ;;  %v462_v14 = vadd.f32 %v2509_v54, %v461_v10  ;;  %v2411_v10 = vld [vmem:[#allocation2 + $0x3ec] sm:$0xf0] }
 0x13c   : > { %975 = vmatpush.bf16.msra.mxu1 %v2139_v5  ;;  %v2199_v15 = vor.u32 %v2411_v10, %v2198_v8  ;;  %939 = vmatpush.bf16.msrb.mxu3 %v2119_v25  ;;  %v2095_v5 = vor.u32 %v2385_v3, %v2094_v2  ;;  %v2166_v8 = vld [vmem:[#allocation2 + $0x2d0] sm:$0xf] }
 0x13d   : > { %v481_v20 = vadd.f32 %v480_v11, %v462_v14  ;;  %v2410_v11 = vld [vmem:[#allocation2 + $0x3d4] sm:$0xf]  ;;  %v2131_v14 = vor.u32 %v2392_v6, %v2128_v7  ;;  %v2167_v10 = vor.u32 %v2403_v9, %v2166_v8 }
 0x13e   : > { %v2203_v16 = vor.u32 %v2410_v11, %v2200_v12  ;;  %956 = vmatpush.bf16.msra.mxu0 %v2199_v15  ;;  %v2096_v6 = vld [vmem:[#allocation2 + $0xb0] sm:$0xf0]  ;;  %v2383_v15 = vld [vmem:[#allocation2 + $0x6c] sm:$0xf0] }
 0x13f   : > { %v489_v23 = vmax.f32 %v481_v20, 0.0  ;;  %v2120_v20 = vld [vmem:[#allocation2 + $0x170] sm:$0xf0]  ;;  %v2099_v7 = vor.u32 %v2384_v4, %v2096_v6  ;;  %v2246_v6 = vld [vmem:[#allocation2 + $0x158] sm:$0xf] }
 0x140   : > { %976 = vmatpush.bf16.msra.mxu1 %v2131_v14  ;;  %v2123_v30 = vor.u32 %v2390_v19, %v2120_v20  ;;  %v2402_v11 = vld [vmem:[#allocation2 + $0x2d4] sm:$0xf]  ;;  %v2086_v14 = vld [vmem:[#allocation2 + $0x50] sm:$0xf] }
 0x141   : > { %v492_v27 = vpack.c.bf16 %v489_v23, %v488_v22  ;;  %v2409_v22 = vld [vmem:[#allocation2 + $0x3ac] sm:$0xf0]  ;;  %v2408_v23 = vld [vmem:[#allocation2 + $0x394] sm:$0xf]  ;;  %v2087_v17 = vor.u32 %v2383_v15, %v2086_v14 }
 0x142   : > { %v464_v28 = vpop.f32.mrf.mxu2  ;;  %v2191_v26 = vor.u32 %v2409_v22, %v2190_v21  ;;  %v2168_v12 = vld [vmem:[#allocation2 + $0x2f0] sm:$0xf0]  ;;  %v2158_v20 = vld [vmem:[#allocation2 + $0x290] sm:$0xf] }
 0x143   : > { %v483_v29 = vpop.f32.mrf.mxu3  ;;  %570 = vmatmul.bf16.vlgmr.msrb.gmra.mxu0 %v492_v27  ;;  %v465_v31 = vadd.f32 %v2509_v54, %v464_v28  ;;  %v2195_v27 = vor.u32 %v2408_v23, %v2192_v24  ;;  %v2110_v28 = vld [vmem:[#allocation2 + $0x110] sm:$0xf]  ;;  %v2400_v22 = vld [vmem:[#allocation2 + $0x294] sm:$0xf] }
 0x144   : > { %957 = vmatpush.bf16.msra.mxu0 %v2191_v26  ;;  %977 = vmatpush.bf16.msra.mxu1 %v2123_v30  ;;  %v2401_v21 = vld [vmem:[#allocation2 + $0x2ac] sm:$0xf0]  ;;  %v2160_v24 = vld [vmem:[#allocation2 + $0x2b0] sm:$0xf0] }
 0x145   : > { %v484_v33 = vadd.f32 %v483_v29, %v465_v31  ;;  %v2389_v31 = vld [vmem:[#allocation2 + $0x12c] sm:$0xf0]  ;;  %v2159_v23 = vor.u32 %v2401_v21, %v2158_v20  ;;  %v2163_v25 = vor.u32 %v2400_v22, %v2160_v24  ;;  %v2080_v30 = vld [vmem:[#allocation2 + $0x30] sm:$0xf0] }
 0x146   : > { %v2111_v42 = vor.u32 %v2389_v31, %v2110_v28  ;;  %v2078_v26 = vld [vmem:[#allocation2 + $0x10] sm:$0xf]  ;;  %v2380_v28 = vld [vmem:[#allocation2 + $0x14] sm:$0xf] }
 0x147   : > { %v490_v37 = vmax.f32 %v484_v33, 0.0  ;;  %v2407_v33 = vld [vmem:[#allocation2 + $0x36c] sm:$0xf0]  ;;  %v2083_v31 = vor.u32 %v2380_v28, %v2080_v30 }
 0x148   : > { %940 = vmatpush.bf16.msrb.mxu3 %v2111_v42  ;;  %v2144_v42 = vld [vmem:[#allocation2 + $0x230] sm:$0xf0] }
 0x14a   : > { %v466_v32 = vpop.f32.mrf.mxu2 }
 0x14b   : > { %v467_v34 = vadd.f32 %v2509_v54, %v466_v32  ;;  %v485_v35 = vpop.f32.mrf.mxu3  ;;  %v2027_v54 = vor.u32 %v2366_v52, %v2024_v53  ;;  %v2182_v32 = vld [vmem:[#allocation2 + $0x350] sm:$0xf] }
 0x14c   : > { %v2183_v40 = vor.u32 %v2407_v33, %v2182_v32  ;;  %941 = vmatpush.bf16.msrb.mxu3 %v2103_v49  ;;  %v2150_v32 = vld [vmem:[#allocation2 + $0x250] sm:$0xf]  ;;  %v2426_v49 = vld [vmem:[#allocation2 + $0x1dc] sm:$0xf] }
 0x14d   : > { %v486_v36 = vadd.f32 %v485_v35, %v467_v34  ;;  %714 = vmatpush.bf16.msrb.mxu2 %v2027_v54  ;;  %v2406_v35 = vld [vmem:[#allocation2 + $0x354] sm:$0xf]  ;;  %v2399_v33 = vld [vmem:[#allocation2 + $0x26c] sm:$0xf0] }
 0x14e   : > { %958 = vmatpush.bf16.msra.mxu0 %v2183_v40  ;;  %v2396_v40 = vld [vmem:[#allocation2 + $0x214] sm:$0xf] }
 0x14f   : > { %v491_v38 = vmax.f32 %v486_v36, 0.0  ;;  %v2184_v36 = vld [vmem:[#allocation2 + $0x370] sm:$0xf0] }
 0x150   : > { %v2187_v41 = vor.u32 %v2406_v35, %v2184_v36  ;;  %942 = vmatpush.bf16.msrb.mxu3 %v2095_v5  ;;  %v2151_v35 = vor.u32 %v2399_v33, %v2150_v32  ;;  %v2152_v36 = vld [vmem:[#allocation2 + $0x270] sm:$0xf0]  ;;  %v2318_v32 = vld [vmem:[#allocation2 + $0x398] sm:$0xf] }
 0x151   : > { %v493_v39 = vpack.c.bf16 %v491_v38, %v490_v37  ;;  %715 = vmatpush.bf16.msrb.mxu2 %v2019_v60  ;;  %v2388_v38 = vld [vmem:[#allocation2 + $0x114] sm:$0xf]  ;;  %v2174_v60 = vld [vmem:[#allocation2 + $0x310] sm:$0xf]  ;;  %v2441_v33 = vld [vmem:[#allocation2 + $0x3b4] sm:$0xf0] }
 0x152   : > { %v2175_v63 = vor.u32 %v2405_v61, %v2174_v60 }
 0x153   : > { %575 = vmatmul.bf16.gmra.mxu0 %v493_v39  ;;  %v2112_v39 = vld [vmem:[#allocation2 + $0x130] sm:$0xf0] }
 0x154   : > { %v2115_v47 = vor.u32 %v2388_v38, %v2112_v39  ;;  %959 = vmatpush.bf16.msra.mxu0 %v2175_v63  ;;  %943 = vmatpush.bf16.msrb.mxu3 %v2087_v17  ;;  %v2142_v38 = vld [vmem:[#allocation2 + $0x210] sm:$0xf]  ;;  %v2256_v63 = vld [vmem:[#allocation2 + $0x1b8] sm:$0xf0] }
 0x155   : > { %994 = vmatpush.bf16.msra.mxu2 %v2203_v16  ;;  %v2382_v16 = vld [vmem:[#allocation2 + $0x54] sm:$0xf]  ;;  %v2397_v39 = vld [vmem:[#allocation2 + $0x22c] sm:$0xf0] }
 0x156   : > { %978 = vmatpush.bf16.msra.mxu1 %v2115_v47  ;;  %v2091_v19 = vor.u32 %v2382_v16, %v2088_v18  ;;  %v2262_v47 = vld [vmem:[#allocation2 + $0x1d8] sm:$0xf] }
 0x158   : > { %960 = vmatpush.bf16.msra.mxu0 %v2167_v10 }
 0x159   : > { %995 = vmatpush.bf16.msra.mxu2 %v2195_v27  ;;  %v2381_v27 = vld [vmem:[#allocation2 + $0x2c] sm:$0xf0] }
 0x15a   : > { %979 = vmatpush.bf16.msra.mxu1 %v2107_v59  ;;  %v2424_v59 = vld [vmem:[#allocation2 + $0x19c] sm:$0xf] }
 0x15b   : > { %v2259_v4 = vor.u32 %v2424_v59, %v2256_v63  ;;  %v2232_v59 = vld [vmem:[#allocation2 + $0xf8] sm:$0xf0] }
 0x15c   : > { %961 = vmatpush.bf16.msra.mxu0 %v2159_v23  ;;  %v2304_v63 = vld [vmem:[#allocation2 + $0x338] sm:$0xf0] }
 0x15d   : > { %996 = vmatpush.bf16.msra.mxu2 %v2187_v41  ;;  %v2143_v41 = vor.u32 %v2397_v39, %v2142_v38  ;;  %v2320_v38 = vld [vmem:[#allocation2 + $0x3b8] sm:$0xf0] }
 0x15e   : > { %980 = vmatpush.bf16.msra.mxu1 %v2099_v7  ;;  %v2423_v7 = vld [vmem:[#allocation2 + $0x174] sm:$0xf0] }
 0x15f   : > { %v2247_v10 = vor.u32 %v2423_v7, %v2246_v6  ;;  %v2435_v6 = vld [vmem:[#allocation2 + $0x2f4] sm:$0xf0]  ;;  %v2416_v7 = vld [vmem:[#allocation2 + $0x9c] sm:$0xf] }
 0x160   : > { %962 = vmatpush.bf16.msra.mxu0 %v2151_v35  ;;  %v2319_v35 = vor.u32 %v2441_v33, %v2318_v32  ;;  %v2208_v32 = vld [vmem:[#allocation2 + $0x38] sm:$0xf0] }
 0x162   : > { %981 = vmatpush.bf16.msra.mxu1 %v2091_v19 }
 0x164   : > { %963 = vmatpush.bf16.msra.mxu0 %v2143_v41  ;;  %v2238_v41 = vld [vmem:[#allocation2 + $0x118] sm:$0xf] }
 0x166   : > { %982 = vmatpush.bf16.msra.mxu1 %v2083_v31 }
 0x1c0   : > { %v571_v0 = vpop.f32.mrf.mxu0 }
 0x1c1   : > { %v572_v29 = vadd.f32 %v2510_v13, %v571_v0  ;;  %v2176_v0 = vld [vmem:[#allocation2 + $0x330] sm:$0xf0] }
 0x1c2   : > { %v2179_v1 = vor.u32 %v2404_v62, %v2176_v0  ;;  %v2327_v62 = vor.u32 %v2443_v58, %v2326_v57  ;;  %v2442_v0 = vld [vmem:[#allocation2 + $0x3dc] sm:$0xf]  ;;  %v2437_v57 = vld [vmem:[#allocation2 + $0x334] sm:$0xf0] }
 0x1c3   : > { %v581_v43 = vmax.f32 %v572_v29, 0.0  ;;  %v2079_v29 = vor.u32 %v2381_v27, %v2078_v26  ;;  %v2418_v58 = vld [vmem:[#allocation2 + $0xdc] sm:$0xf] }
 0x1c4   : > { %997 = vmatpush.bf16.msra.mxu2 %v2179_v1  ;;  %v2328_v1 = vld [vmem:[#allocation2 + $0x3f8] sm:$0xf0]  ;;  %1242 = vmatpush.bf16.msrb.mxu0 %v2327_v62 }
 0x1c5   : > { %944 = vmatpush.bf16.msrb.mxu3 %v2079_v29  ;;  %v2785_v5 = vor.u32 %v2442_v0, %v2328_v1  ;;  %v2436_v62 = vld [vmem:[#allocation2 + $0x31c] sm:$0xf]  ;;  %v2222_v1 = vld [vmem:[#allocation2 + $0x98] sm:$0xf] }
 0x1c6   : > { %v2794_v0 = vor.u32 %v2436_v62, %v2304_v63 }
 0x1c8   : > { %v573_v34 = vpop.f32.mrf.mxu0  ;;  %1243 = vmatpush.bf16.msrb.mxu0 %v2319_v35  ;;  %v2430_v35 = vld [vmem:[#allocation2 + $0x25c] sm:$0xf] }
 0x1c9   : > { %v574_v37 = vadd.f32 %v2510_v13, %v573_v34  ;;  %v2398_v34 = vld [vmem:[#allocation2 + $0x254] sm:$0xf] }
 0x1cb   : > { %v582_v44 = vmax.f32 %v574_v37, 0.0  ;;  %v2155_v37 = vor.u32 %v2398_v34, %v2152_v36  ;;  %v2422_v34 = vld [vmem:[#allocation2 + $0x15c] sm:$0xf] }
 0x1cc   : > { %v2248_v36 = vld [vmem:[#allocation2 + $0x178] sm:$0xf0] }
 0x1cd   : > { %v585_v48 = vpack.c.bf16 %v582_v44, %v581_v43  ;;  %v2147_v43 = vor.u32 %v2396_v40, %v2144_v42  ;;  %v603_v44 = vld [vmem:[%s3031_s3 + $0x4] sm:$0x3]  ;;  %v2251_v39 = vor.u32 %v2422_v34, %v2248_v36  ;;  %v2421_v42 = vld [vmem:[#allocation2 + $0x134] sm:$0xf0] }
 0x1ce   : > { %v605_v46 = vperm.slane %v603_v44, 0  ;;  %v606_v2 = vperm.slane %v603_v44, 1  ;;  %v2239_v44 = vor.u32 %v2421_v42, %v2238_v41  ;;  %v2280_v36 = vld [vmem:[#allocation2 + $0x278] sm:$0xf0] }
 0x1cf   : > { %697 = vmatmul.bf16.vlgmr.msrb.gmra.mxu1 %v585_v48  ;;  %716 = vmatmul.bf16.vlgmr.msrb.gmra.mxu2 %v585_v48  ;;  %v2427_v48 = vld [vmem:[#allocation2 + $0x1f4] sm:$0xf0]  ;;  %v2428_v41 = vld [vmem:[#allocation2 + $0x21c] sm:$0xf] }
 0x1d0   : > { %v576_v50 = vpop.f32.mrf.mxu0 }
 0x1d1   : > { %v577_v51 = vadd.f32 %v2510_v13, %v576_v50 }
 0x1d3   : > { %v583_v54 = vmax.f32 %v577_v51, 0.0  ;;  %v2263_v51 = vor.u32 %v2427_v48, %v2262_v47  ;;  %v2240_v47 = vld [vmem:[#allocation2 + $0x138] sm:$0xf0] }
 0x1d5   : > { %1223 = vmatpush.bf16.msra.mxu3 %v2263_v51  ;;  %v2312_v51 = vld [vmem:[#allocation2 + $0x378] sm:$0xf0] }
 0x1d8   : > { %v578_v52 = vpop.f32.mrf.mxu0 }
 0x1d9   : > { %v579_v53 = vadd.f32 %v2510_v13, %v578_v52  ;;  %v2171_v13 = vor.u32 %v2402_v11, %v2168_v12  ;;  %v2264_v52 = vld [vmem:[#allocation2 + $0x1f8] sm:$0xf0] }
 0x1db   : > { %v584_v55 = vmax.f32 %v579_v53, 0.0  ;;  %998 = vmatpush.bf16.msra.mxu2 %v2171_v13  ;;  %v2254_v53 = vld [vmem:[#allocation2 + $0x198] sm:$0xf] }
 0x1dd   : > { %v586_v56 = vpack.c.bf16 %v584_v55, %v583_v54  ;;  %v2425_v54 = vld [vmem:[#allocation2 + $0x1b4] sm:$0xf0] }
 0x1de   : > { %v2255_v61 = vor.u32 %v2425_v54, %v2254_v53  ;;  %v2230_v53 = vld [vmem:[#allocation2 + $0xd8] sm:$0xf] }
 0x1df   : > { %702 = vmatmul.bf16.gmra.mxu1 %v586_v56  ;;  %721 = vmatmul.bf16.gmra.mxu2 %v586_v56  ;;  %v2267_v56 = vor.u32 %v2426_v49, %v2264_v52  ;;  %v2419_v54 = vld [vmem:[#allocation2 + $0xf4] sm:$0xf0] }
 0x1e0   : > { %999 = vmatpush.bf16.msra.mxu2 %v2163_v25  ;;  %1224 = vmatpush.bf16.msra.mxu3 %v2255_v61  ;;  %v2235_v61 = vor.u32 %v2418_v58, %v2232_v59 }
 0x1e1   : > { %1261 = vmatpush.bf16.msrb.mxu1 %v2267_v56  ;;  %v2231_v56 = vor.u32 %v2419_v54, %v2230_v53 }
 0x1e4   : > { %1000 = vmatpush.bf16.msra.mxu2 %v2155_v37  ;;  %1225 = vmatpush.bf16.msra.mxu3 %v2247_v10  ;;  %v2440_v37 = vld [vmem:[#allocation2 + $0x39c] sm:$0xf] }
 0x1e5   : > { %1262 = vmatpush.bf16.msrb.mxu1 %v2259_v4  ;;  %v2788_v40 = vor.u32 %v2440_v37, %v2320_v38  ;;  %v2283_v37 = vor.u32 %v2430_v35, %v2280_v36  ;;  %v2270_v38 = vld [vmem:[#allocation2 + $0x218] sm:$0xf] }
 0x1e8   : > { %1001 = vmatpush.bf16.msra.mxu2 %v2147_v43  ;;  %v2310_v43 = vld [vmem:[#allocation2 + $0x358] sm:$0xf]  ;;  %1226 = vmatpush.bf16.msra.mxu3 %v2239_v44 }
 0x1e9   : > { %1263 = vmatpush.bf16.msrb.mxu1 %v2251_v39  ;;  %v2429_v39 = vld [vmem:[#allocation2 + $0x234] sm:$0xf0] }
 0x1ea   : > { %v2271_v42 = vor.u32 %v2429_v39, %v2270_v38 }
 0x1ec   : > { %1280 = vmatpush.bf16.msrb.mxu2 %v2785_v5  ;;  %1227 = vmatpush.bf16.msra.mxu3 %v2231_v56 }
 0x1f0   : > { %1281 = vmatpush.bf16.msrb.mxu2 %v2788_v40 }
 0x24c   : > { %v698_v45 = vpop.f32.mrf.mxu1 }
 0x24d   : > { %v699_v55 = vadd.f32 %v698_v45, %v605_v46  ;;  %v2439_v45 = vld [vmem:[#allocation2 + $0x374] sm:$0xf0] }
 0x24e   : > { %v2311_v48 = vor.u32 %v2439_v45, %v2310_v43  ;;  %v2272_v43 = vld [vmem:[#allocation2 + $0x238] sm:$0xf0] }
 0x24f   : > { %v727_v8 = vmax.f32 %v699_v55, 0.0  ;;  %v2302_v55 = vld [vmem:[#allocation2 + $0x318] sm:$0xf]  ;;  %v2275_v44 = vor.u32 %v2428_v41, %v2272_v43 }
 0x250   : > { %1244 = vmatpush.bf16.msrb.mxu0 %v2311_v48 }
 0x252   : > { %v717_v50 = vpop.f32.mrf.mxu2 }
 0x253   : > { %v718_v11 = vadd.f32 %v717_v50, %v606_v2  ;;  %v2438_v50 = vld [vmem:[#allocation2 + $0x35c] sm:$0xf] }
 0x254   : > { %v700_v60 = vpop.f32.mrf.mxu1  ;;  %v2791_v52 = vor.u32 %v2438_v50, %v2312_v51 }
 0x255   : > { %v701_v3 = vadd.f32 %v700_v60, %v605_v46  ;;  %v728_v16 = vmax.f32 %v718_v11, 0.0  ;;  %v2303_v60 = vor.u32 %v2437_v57, %v2302_v55  ;;  %v2434_v11 = vld [vmem:[#allocation2 + $0x2dc] sm:$0xf] }
 0x256   : > { %1282 = vmatpush.bf16.msrb.mxu2 %v2791_v52 }
 0x257   : > { %v729_v9 = vmax.f32 %v701_v3, 0.0  ;;  %1245 = vmatpush.bf16.msrb.mxu0 %v2303_v60  ;;  %v2294_v3 = vld [vmem:[#allocation2 + $0x2d8] sm:$0xf] }
 0x259   : > { %v735_v12 = vpack.c.bf16 %v729_v9, %v727_v8  ;;  %v2224_v8 = vld [vmem:[#allocation2 + $0xb8] sm:$0xf0]  ;;  %v2295_v9 = vor.u32 %v2435_v6, %v2294_v3 }
 0x25a   : > { %v719_v13 = vpop.f32.mrf.mxu2  ;;  %1283 = vmatpush.bf16.msrb.mxu2 %v2794_v0  ;;  %v2227_v10 = vor.u32 %v2416_v7, %v2224_v8 }
 0x25b   : > { %v720_v14 = vadd.f32 %v719_v13, %v606_v2  ;;  %945 = vmatmul.bf16.vlgmr.msrb.gmra.mxu3 %v735_v12  ;;  %983 = vmatmul.bf16.vlgmr.msra.gmra.mxu1 %v735_v12  ;;  %v2296_v12 = vld [vmem:[#allocation2 + $0x2f8] sm:$0xf0] }
 0x25c   : > { %v703_v15 = vpop.f32.mrf.mxu1  ;;  %v2299_v13 = vor.u32 %v2434_v11, %v2296_v12  ;;  %1246 = vmatpush.bf16.msrb.mxu0 %v2295_v9 }
 0x25d   : > { %v730_v17 = vmax.f32 %v720_v14, 0.0  ;;  %v704_v20 = vadd.f32 %v703_v15, %v605_v46  ;;  %v2214_v14 = vld [vmem:[#allocation2 + $0x58] sm:$0xf] }
 0x25e   : > { %v2415_v15 = vld [vmem:[#allocation2 + $0x74] sm:$0xf0]  ;;  %1284 = vmatpush.bf16.msrb.mxu2 %v2299_v13 }
 0x25f   : > { %v736_v18 = vpack.c.bf16 %v730_v17, %v728_v16  ;;  %v731_v23 = vmax.f32 %v704_v20, 0.0  ;;  %v2286_v16 = vld [vmem:[#allocation2 + $0x298] sm:$0xf]  ;;  %v2215_v17 = vor.u32 %v2415_v15, %v2214_v14  ;;  %v2216_v20 = vld [vmem:[#allocation2 + $0x78] sm:$0xf0] }
 0x261   : > { %964 = vmatmul.bf16.vlgmr.msra.gmra.mxu0 %v736_v18  ;;  %1002 = vmatmul.bf16.vlgmr.msra.gmra.mxu2 %v736_v18  ;;  %v2433_v18 = vld [vmem:[#allocation2 + $0x2b4] sm:$0xf0] }
 0x262   : > { %v722_v19 = vpop.f32.mrf.mxu2 }
 0x263   : > { %v723_v25 = vadd.f32 %v722_v19, %v606_v2  ;;  %v2414_v19 = vld [vmem:[#allocation2 + $0x5c] sm:$0xf] }
 0x264   : > { %v705_v21 = vpop.f32.mrf.mxu1 }
 0x265   : > { %v706_v22 = vadd.f32 %v705_v21, %v605_v46  ;;  %v732_v29 = vmax.f32 %v723_v25, 0.0  ;;  %v2420_v46 = vld [vmem:[#allocation2 + $0x11c] sm:$0xf]  ;;  %v2287_v21 = vor.u32 %v2433_v18, %v2286_v16 }
 0x266   : > { %v2243_v49 = vor.u32 %v2420_v46, %v2240_v47  ;;  %v771_v46 = vld [vmem:[%s3031_s3 + $0x6] sm:$0x3] }
 0x267   : > { %v733_v24 = vmax.f32 %v706_v22, 0.0  ;;  %v2219_v22 = vor.u32 %v2414_v19, %v2216_v20  ;;  %1247 = vmatpush.bf16.msrb.mxu0 %v2287_v21  ;;  %v774_v53 = vperm.slane %v771_v46, 1 }
 0x268   : > { %1264 = vmatpush.bf16.msrb.mxu1 %v2243_v49 }
 0x269   : > { %v737_v26 = vpack.c.bf16 %v733_v24, %v731_v23  ;;  %v2432_v23 = vld [vmem:[#allocation2 + $0x29c] sm:$0xf] }
 0x26a   : > { %v724_v27 = vpop.f32.mrf.mxu2  ;;  %v2288_v24 = vld [vmem:[#allocation2 + $0x2b8] sm:$0xf0] }
 0x26b   : > { %v725_v28 = vadd.f32 %v724_v27, %v606_v2  ;;  %950 = vmatmul.bf16.gmra.mxu3 %v737_v26  ;;  %988 = vmatmul.bf16.gmra.mxu1 %v737_v26  ;;  %v2417_v2 = vld [vmem:[#allocation2 + $0xb4] sm:$0xf0]  ;;  %v2291_v25 = vor.u32 %v2432_v23, %v2288_v24 }
 0x26c   : > { %1265 = vmatpush.bf16.msrb.mxu1 %v2235_v61  ;;  %v2223_v4 = vor.u32 %v2417_v2, %v2222_v1  ;;  %v2206_v26 = vld [vmem:[#allocation2 + $0x18] sm:$0xf] }
 0x26d   : > { %v734_v30 = vmax.f32 %v725_v28, 0.0  ;;  %v2413_v27 = vld [vmem:[#allocation2 + $0x34] sm:$0xf0]  ;;  %1285 = vmatpush.bf16.msrb.mxu2 %v2291_v25 }
 0x26e   : > { %1228 = vmatpush.bf16.msra.mxu3 %v2223_v4  ;;  %v2278_v28 = vld [vmem:[#allocation2 + $0x258] sm:$0xf] }
 0x26f   : > { %v738_v31 = vpack.c.bf16 %v734_v30, %v732_v29  ;;  %v2207_v29 = vor.u32 %v2413_v27, %v2206_v26  ;;  %v2431_v30 = vld [vmem:[#allocation2 + $0x274] sm:$0xf0]  ;;  %v1057_v27 = vld [vmem:[%s3031_s3 + $0x8] sm:$0x3] }
 0x270   : > { %1266 = vmatpush.bf16.msrb.mxu1 %v2227_v10  ;;  %v2279_v33 = vor.u32 %v2431_v30, %v2278_v28  ;;  %v2809_v30 = vperm.slane %v1057_v27, 0 }
 0x271   : > { %969 = vmatmul.bf16.gmra.mxu0 %v738_v31  ;;  %1007 = vmatmul.bf16.gmra.mxu2 %v738_v31  ;;  %v2412_v31 = vld [vmem:[#allocation2 + $0x1c] sm:$0xf] }
 0x272   : > { %1229 = vmatpush.bf16.msra.mxu3 %v2215_v17  ;;  %v2211_v34 = vor.u32 %v2412_v31, %v2208_v32  ;;  %1248 = vmatpush.bf16.msrb.mxu0 %v2279_v33 }
 0x273   : > { %1286 = vmatpush.bf16.msrb.mxu2 %v2283_v37 }
 0x274   : > { %1267 = vmatpush.bf16.msrb.mxu1 %v2219_v22 }
 0x276   : > { %1230 = vmatpush.bf16.msra.mxu3 %v2207_v29  ;;  %1249 = vmatpush.bf16.msrb.mxu0 %v2271_v42  ;;  %v2807_v29 = vperm.slane %v1057_v27, 1 }
 0x277   : > { %1287 = vmatpush.bf16.msrb.mxu2 %v2275_v44 }
 0x278   : > { %1268 = vmatpush.bf16.msrb.mxu1 %v2211_v34 }
 0x27a   : > { %2444 = vmatpush.bf16.msrb.mxu3 %v2785_v5  ;;  %v773_v5 = vperm.slane %v771_v46, 0 }
 0x27e   : > { %2445 = vmatpush.bf16.msrb.mxu3 %v2788_v40 }
 0x282   : > { %2446 = vmatpush.bf16.msrb.mxu3 %v2791_v52 }
 0x286   : > { %2447 = vmatpush.bf16.msrb.mxu3 %v2794_v0 }
 0x28a   : > { %2448 = vmatpush.bf16.msrb.mxu3 %v2299_v13 }
 0x28e   : > { %2449 = vmatpush.bf16.msrb.mxu3 %v2291_v25 }
 0x292   : > { %2450 = vmatpush.bf16.msrb.mxu3 %v2283_v37 }
 0x296   : > { %2451 = vmatpush.bf16.msrb.mxu3 %v2275_v44 }
 0x2d8   : > { %v984_v45 = vpop.f32.mrf.mxu1 }
 0x2d9   : > { %v985_v56 = vadd.f32 %v984_v45, %v774_v53 }
 0x2de   : > { %v946_v47 = vpop.f32.mrf.mxu3  ;;  %v965_v48 = vpop.f32.mrf.mxu0 }
 0x2df   : > { %v947_v49 = vadd.f32 %v946_v47, %v773_v5 }
 0x2e0   : > { %v986_v50 = vpop.f32.mrf.mxu1 }
 0x2e1   : > { %v966_v52 = vadd.f32 %v965_v48, %v947_v49  ;;  %v987_v59 = vadd.f32 %v986_v50, %v774_v53 }
 0x2e3   : > { %v1013_v58 = vmax.f32 %v966_v52, 0.0 }
 0x2e4   : > { %v1003_v51 = vpop.f32.mrf.mxu2 }
 0x2e5   : > { %v1004_v60 = vadd.f32 %v1003_v51, %v985_v56 }
 0x2e6   : > { %v948_v54 = vpop.f32.mrf.mxu3  ;;  %v967_v40 = vpop.f32.mrf.mxu0 }
 0x2e7   : > { %v949_v55 = vadd.f32 %v948_v54, %v773_v5  ;;  %v1014_v4 = vmax.f32 %v1004_v60, 0.0 }
 0x2e8   : > { %v989_v0 = vpop.f32.mrf.mxu1 }
 0x2e9   : > { %v968_v57 = vadd.f32 %v967_v40, %v949_v55  ;;  %v990_v15 = vadd.f32 %v989_v0, %v774_v53 }
 0x2eb   : > { %v1015_v61 = vmax.f32 %v968_v57, 0.0 }
 0x2ec   : > { %v1005_v62 = vpop.f32.mrf.mxu2 }
 0x2ed   : > { %v1021_v63 = vpack.c.bf16 %v1015_v61, %v1013_v58  ;;  %v1006_v1 = vadd.f32 %v1005_v62, %v987_v59 }
 0x2ee   : > { %v951_v2 = vpop.f32.mrf.mxu3  ;;  %v970_v3 = vpop.f32.mrf.mxu0 }
 0x2ef   : > { %v1016_v6 = vmax.f32 %v1006_v1, 0.0  ;;  %1231 = vmatmul.bf16.vlgmr.msra.gmra.mxu3 %v1021_v63  ;;  %1269 = vmatmul.bf16.vlgmr.msrb.gmra.mxu1 %v1021_v63  ;;  %v952_v8 = vadd.f32 %v951_v2, %v773_v5 }
 0x2f0   : > { %v991_v13 = vpop.f32.mrf.mxu1 }
 0x2f1   : > { %v1022_v7 = vpack.c.bf16 %v1016_v6, %v1014_v4  ;;  %v971_v11 = vadd.f32 %v970_v3, %v952_v8  ;;  %v992_v18 = vadd.f32 %v991_v13, %v774_v53 }
 0x2f3   : > { %1250 = vmatmul.bf16.vlgmr.msrb.gmra.mxu0 %v1022_v7  ;;  %1288 = vmatmul.bf16.vlgmr.msrb.gmra.mxu2 %v1022_v7  ;;  %v1017_v17 = vmax.f32 %v971_v11, 0.0 }
 0x2f4   : > { %v1008_v9 = vpop.f32.mrf.mxu2 }
 0x2f5   : > { %v1009_v19 = vadd.f32 %v1008_v9, %v990_v15 }
 0x2f6   : > { %v953_v10 = vpop.f32.mrf.mxu3  ;;  %v972_v14 = vpop.f32.mrf.mxu0 }
 0x2f7   : > { %v954_v12 = vadd.f32 %v953_v10, %v773_v5  ;;  %v1018_v24 = vmax.f32 %v1009_v19, 0.0 }
 0x2f9   : > { %v973_v16 = vadd.f32 %v972_v14, %v954_v12 }
 0x2fb   : > { %v1019_v20 = vmax.f32 %v973_v16, 0.0 }
 0x2fc   : > { %v1010_v21 = vpop.f32.mrf.mxu2 }
 0x2fd   : > { %v1011_v22 = vadd.f32 %v1010_v21, %v992_v18  ;;  %v1023_v23 = vpack.c.bf16 %v1019_v20, %v1017_v17 }
 0x2ff   : > { %v1020_v25 = vmax.f32 %v1011_v22, 0.0  ;;  %1236 = vmatmul.bf16.gmra.mxu3 %v1023_v23  ;;  %1274 = vmatmul.bf16.gmra.mxu1 %v1023_v23 }
 0x301   : > { %v1024_v26 = vpack.c.bf16 %v1020_v25, %v1018_v24 }
 0x303   : > { %1255 = vmatmul.bf16.gmra.mxu0 %v1024_v26 }
 0x30f   : > { %1293 = vmatmul.bf16.vlgmr.msrb.gmra.mxu3 %v1024_v26 }
 0x36c   : > { %v1270_v28 = vpop.f32.mrf.mxu1 }
 0x36d   : > { %v1271_v32 = vadd.f32 %v1270_v28, %v2807_v29 }
 0x370   : > { %v1251_v34 = vpop.f32.mrf.mxu0 }
 0x372   : > { %v1232_v31 = vpop.f32.mrf.mxu3 }
 0x373   : > { %v1233_v33 = vadd.f32 %v1232_v31, %v2809_v30 }
 0x374   : > { %v1272_v39 = vpop.f32.mrf.mxu1 }
 0x375   : > { %v1252_v37 = vadd.f32 %v1251_v34, %v1233_v33  ;;  %v1273_v45 = vadd.f32 %v1272_v39, %v2807_v29 }
 0x376   : > { %v1289_v35 = vpop.f32.mrf.mxu2 }
 0x377   : > { %v1290_v36 = vadd.f32 %v1289_v35, %v1271_v32 }
 0x378   : > { %v1253_v5 = vpop.f32.mrf.mxu0 }
 0x379   : > { %v1307_v38 = vrot.slane %v1290_v36, 4 }
 0x37a   : > { %v1234_v41 = vpop.f32.mrf.mxu3 }
 0x37b   : > { %v2814_v42 = vsel %vm1311_vm2, %v1252_v37, %v1307_v38  ;;  %v1313_v43 = vsel %vm1311_vm2, %v1307_v38, %v1252_v37  ;;  %v1235_v46 = vadd.f32 %v1234_v41, %v2809_v30 }
 0x37c   : > { %v2817_v44 = vrot.slane %v1313_v43, 4  ;;  %1332 = vst [vmem:[#allocation1] ss:$2 sm:$0xff] %v2814_v42  ;;  %v1275_v3 = vpop.f32.mrf.mxu1  ;;  %v1416_v10 = vrot.slane %v2814_v42, 4 }
 0x37d   : > { %v1254_v49 = vadd.f32 %v1253_v5, %v1235_v46  ;;  %v1276_v17 = vadd.f32 %v1275_v3, %v2807_v29 }
 0x37e   : > { %1335 = vst [vmem:[#allocation1 + $0x10] ss:$2 sm:$0xff] %v2817_v44  ;;  %v1291_v47 = vpop.f32.mrf.mxu2  ;;  %v1417_v16 = vrot.slane %v2817_v44, 4 }
 0x37f   : > { %v1292_v48 = vadd.f32 %v1291_v47, %v1273_v45 }
 0x380   : > { %v1256_v23 = vpop.f32.mrf.mxu0 }
 0x381   : > { %v1308_v50 = vrot.slane %v1292_v48, 4 }
 0x382   : > { %v1237_v51 = vpop.f32.mrf.mxu3 }
 0x383   : > { %v2824_v53 = vsel %vm1311_vm2, %v1254_v49, %v1308_v50  ;;  %v1316_v54 = vsel %vm1311_vm2, %v1308_v50, %v1254_v49  ;;  %v1333_v40 = vld.sshfl [vmem:[#allocation1 + $0x8] sm:$0xff pattern:$0x75316420]  ;;  %v1238_v18 = vadd.f32 %v1237_v51, %v2809_v30 }
 0x384   : > { %v2827_v52 = vrot.slane %v1316_v54, 4  ;;  %1338 = vst [vmem:[#allocation1 + $0x20] ss:$2 sm:$0xff] %v2824_v53  ;;  %v1360_v55 = vsel %vm1359_vm3, %v1333_v40, -inf  ;;  %v1418_v36 = vrot.slane %v2824_v53, 4  ;;  %v1277_v37 = vpop.f32.mrf.mxu1 }
 0x385   : > { %v1336_v56 = vld.sshfl [vmem:[#allocation1 + $0x18] sm:$0xff pattern:$0x75316420]  ;;  %v1361_v57 = vrot.slane %v1360_v55, 4  ;;  %v1257_v31 = vadd.f32 %v1256_v23, %v1238_v18  ;;  %v1278_v47 = vadd.f32 %v1277_v37, %v2807_v29 }
 0x386   : > { %1341 = vst [vmem:[#allocation1 + $0x30] ss:$2 sm:$0xff] %v2827_v52  ;;  %v1367_v58 = vsel %vm1359_vm3, %v1336_v56, -inf  ;;  %v1419_v49 = vrot.slane %v2827_v52, 4 }
 0x387   : > { %v1368_v59 = vrot.slane %v1367_v58, 4  ;;  %v1362_v60 = vmax.f32 %v1360_v55, %v1361_v57  ;;  %v2660_v55 = vmov 0  }
 0x388   : > { %2506 = vset.pattern.permute.xlu0 %v2660_v55  ;;  %2507 = vset.pattern.permute.xlu1 %v2660_v55  ;;  %v1258_v57 = vpop.f32.mrf.mxu0 }
 0x389   : > { %v1363_v61 = vrot.slane %v1362_v60, 2  ;;  %v1369_v62 = vmax.f32 %v1367_v58, %v1368_v59  ;;  %2508 = vset.pattern.permute.xlu2 %v2660_v55 }
 0x38a   : > { %v1239_v63 = vpop.f32.mrf.mxu3 }
 0x38b   : > { %v1339_v0 = vld.sshfl [vmem:[#allocation1 + $0x28] sm:$0xff pattern:$0x75316420]  ;;  %v1364_v1 = vmax.f32 %v1362_v60, %v1363_v61  ;;  %v1370_v2 = vrot.slane %v1369_v62, 2  ;;  %v1240_v48 = vadd.f32 %v1239_v63, %v2809_v30 }
 0x38c   : > { %v1374_v4 = vsel %vm1359_vm3, %v1339_v0, -inf }
 0x38d   : > { %v1342_v6 = vld.sshfl [vmem:[#allocation1 + $0x38] sm:$0xff pattern:$0x75316420]  ;;  %v1375_v7 = vrot.slane %v1374_v4, 4  ;;  %v1365_v8 = vrot.slane %v1364_v1, 1  ;;  %v1371_v9 = vmax.f32 %v1369_v62, %v1370_v2  ;;  %v1259_v59 = vadd.f32 %v1258_v57, %v1240_v48 }
 0x38e   : > { %v1381_v11 = vsel %vm1359_vm3, %v1342_v6, -inf }
 0x38f   : > { %v1382_v12 = vrot.slane %v1381_v11, 4  ;;  %v1366_v13 = vmax.f32 %v1364_v1, %v1365_v8  ;;  %v1376_v14 = vmax.f32 %v1374_v4, %v1375_v7  ;;  %v1372_v15 = vrot.slane %v1371_v9, 1 }
 0x391   : > { %v1432_v19 = vsub.f32 %v1416_v10, %v1366_v13  ;;  %v1377_v20 = vrot.slane %v1376_v14, 2  ;;  %v1373_v21 = vmax.f32 %v1371_v9, %v1372_v15  ;;  %v1383_v22 = vmax.f32 %v1381_v11, %v1382_v12 }
 0x392   : > { %v1294_v24 = vpop.f32.mrf.mxu3 }
 0x393   : > { %v1295_v25 = vadd.f32 %v1294_v24, %v1276_v17  ;;  %v1440_v26 = vmul.f32 1.442695, %v1432_v19  ;;  %v1378_v27 = vmax.f32 %v1376_v14, %v1377_v20  ;;  %v1433_v28 = vsub.f32 %v1417_v16, %v1373_v21 }
 0x394   : > { %v1384_v32 = vrot.slane %v1383_v22, 2 }
 0x395   : > { %v1309_v33 = vrot.slane %v1295_v25, 4  ;;  %2511 = vpow2.f32 %v1440_v26  ;;  %v1379_v34 = vrot.slane %v1378_v27, 1  ;;  %v1442_v35 = vmul.f32 1.442695, %v1433_v28 }
 0x396   : > { %v1385_v38 = vmax.f32 %v1383_v22, %v1384_v32 }
 0x397   : > { %v2841_v39 = vsel %vm1311_vm2, %v1257_v31, %v1309_v33  ;;  %v1319_v41 = vsel %vm1311_vm2, %v1309_v33, %v1257_v31  ;;  %v1380_v43 = vmax.f32 %v1378_v27, %v1379_v34  ;;  %2513 = vpow2.f32 %v1442_v35 }
 0x398   : > { %v2844_v45 = vrot.slane %v1319_v41, 4  ;;  %1343 = vst [vmem:[#allocation1] ss:$2 sm:$0xff] %v2841_v39  ;;  %v1386_v46 = vrot.slane %v1385_v38, 1 }
 0x399   : > { %v1434_v5 = vsub.f32 %v1418_v36, %v1380_v43 }
 0x39a   : > { %1345 = vst [vmem:[#allocation1 + $0x10] ss:$2 sm:$0xff] %v2844_v45  ;;  %v1296_v50 = vpop.f32.mrf.mxu3  ;;  %v1387_v51 = vmax.f32 %v1385_v38, %v1386_v46 }
 0x39b   : > { %v2851_v54 = vpop.eup %2511  ;;  %v1297_v40 = vadd.f32 %v1296_v50, %v1278_v47  ;;  %v1444_v56 = vmul.f32 1.442695, %v1434_v5  ;;  %v1420_v50 = vrot.slane %v2841_v39, 4 }
 0x39c   : > { %v1456_v29 = vsel %vm1359_vm3, %v2851_v54, 0.0  ;;  %v1435_v58 = vsub.f32 %v1419_v49, %v1387_v51 }
 0x39d   : > { %v2855_v30 = vpop.eup %2513  ;;  %v1310_v60 = vrot.slane %v1297_v40, 4  ;;  %v1457_v61 = vrot.slane %v1456_v29, 4  ;;  %2515 = vpow2.f32 %v1444_v56 }
 0x39e   : > { %v1463_v62 = vsel %vm1359_vm3, %v2855_v30, 0.0  ;;  %v1446_v63 = vmul.f32 1.442695, %v1435_v58 }
 0x39f   : > { %v2860_v0 = vsel %vm1311_vm2, %v1259_v59, %v1310_v60  ;;  %v1322_v1 = vsel %vm1311_vm2, %v1310_v60, %v1259_v59  ;;  %v1458_v2 = vadd.f32 %v1457_v61, %v1456_v29  ;;  %v1464_v3 = vrot.slane %v1463_v62, 4  ;;  %v1344_v4 = vld.sshfl [vmem:[#allocation1 + $0x8] sm:$0xff pattern:$0x75316420] }
 0x3a0   : > { %v2863_v6 = vrot.slane %v1322_v1, 4  ;;  %1347 = vst [vmem:[#allocation1 + $0x20] ss:$2 sm:$0xff] %v2860_v0  ;;  %2517 = vpow2.f32 %v1446_v63  ;;  %v1388_v7 = vsel %vm1359_vm3, %v1344_v4, -inf  ;;  %v1421_v29 = vrot.slane %v2844_v45, 4 }
 0x3a1   : > { %v1459_v8 = vrot.slane %v1458_v2, 2  ;;  %v1465_v9 = vadd.f32 %v1464_v3, %v1463_v62  ;;  %v1389_v10 = vrot.slane %v1388_v7, 4  ;;  %v1346_v11 = vld.sshfl [vmem:[#allocation1 + $0x18] sm:$0xff pattern:$0x75316420] }
 0x3a2   : > { %1349 = vst [vmem:[#allocation1 + $0x30] ss:$2 sm:$0xff] %v2863_v6  ;;  %v1395_v12 = vsel %vm1359_vm3, %v1346_v11, -inf }
 0x3a3   : > { %v2869_v13 = vpop.eup %2515  ;;  %v1460_v14 = vadd.f32 %v1459_v8, %v1458_v2  ;;  %v1466_v15 = vrot.slane %v1465_v9, 2  ;;  %v1390_v16 = vmax.f32 %v1388_v7, %v1389_v10  ;;  %v1396_v17 = vrot.slane %v1395_v12, 4 }
 0x3a4   : > { %v1470_v18 = vsel %vm1359_vm3, %v2869_v13, 0.0 }
 0x3a5   : > { %v1461_v19 = vrot.slane %v1460_v14, 1  ;;  %v1471_v20 = vrot.slane %v1470_v18, 4  ;;  %v1467_v21 = vadd.f32 %v1466_v15, %v1465_v9  ;;  %v1391_v22 = vrot.slane %v1390_v16, 2 }
 0x3a6   : > { %v2873_v23 = vpop.eup %2517  ;;  %v1397_v24 = vmax.f32 %v1395_v12, %v1396_v17  ;;  %v1422_v9 = vrot.slane %v2860_v0, 4 }
 0x3a7   : > { %v1348_v25 = vld.sshfl [vmem:[#allocation1 + $0x28] sm:$0xff pattern:$0x75316420]  ;;  %v1462_v26 = vadd.f32 %v1461_v19, %v1460_v14  ;;  %v1472_v27 = vadd.f32 %v1471_v20, %v1470_v18  ;;  %v1468_v28 = vrot.slane %v1467_v21, 1  ;;  %v1477_v31 = vsel %vm1359_vm3, %v2873_v23, 0.0 }
 0x3a8   : > { %v1402_v32 = vsel %vm1359_vm3, %v1348_v25, -inf  ;;  %v1478_v33 = vrot.slane %v1477_v31, 4  ;;  %v1392_v34 = vmax.f32 %v1390_v16, %v1391_v22  ;;  %v1398_v35 = vrot.slane %v1397_v24, 2 }
 0x3a9   : > { %v1403_v36 = vrot.slane %v1402_v32, 4  ;;  %2519 = vrcp.f32 %v1462_v26  ;;  %v1473_v37 = vrot.slane %v1472_v27, 2  ;;  %v2878_v38 = vadd.f32 %v1468_v28, %v1467_v21  ;;  %v1350_v56 = vld.sshfl [vmem:[#allocation1 + $0x38] sm:$0xff pattern:$0x75316420] }
 0x3aa   : > { %v1479_v41 = vadd.f32 %v1478_v33, %v1477_v31  ;;  %v1393_v46 = vrot.slane %v1392_v34, 1  ;;  %v1399_v47 = vmax.f32 %v1397_v24, %v1398_v35  ;;  %v1521_v59 = vand.u32 2147483647, %v1462_v26 }
 0x3ab   : > { %v1404_v43 = vmax.f32 %v1402_v32, %v1403_v36  ;;  %v1474_v48 = vadd.f32 %v1473_v37, %v1472_v27  ;;  %2521 = vrcp.f32 %v2878_v38  ;;  %v1523_v62 = vand.u32 2147483648, %v1462_v26 }
 0x3ac   : > { %v1480_v49 = vrot.slane %v1479_v41, 2  ;;  %v1394_v40 = vmax.f32 %v1392_v34, %v1393_v46  ;;  %v1400_v55 = vrot.slane %v1399_v47, 1  ;;  %v1409_v7 = vsel %vm1359_vm3, %v1350_v56, -inf }
 0x3ad   : > { %v1405_v5 = vrot.slane %v1404_v43, 2  ;;  %v1475_v51 = vrot.slane %v1474_v48, 1  ;;  %vm1517_vm4 = vweird.f32 %v1462_v26  ;;  %vm2890_vm6 = vcmp.eq.f32.partialorder %v1521_v59, 8.507059e+37 }
 0x3ae   : > { %v1481_v60 = vadd.f32 %v1480_v49, %v1479_v41  ;;  %v1436_v1 = vsub.f32 %v1420_v50, %v1394_v40  ;;  %v1401_v4 = vmax.f32 %v1399_v47, %v1400_v55  ;;  %v1410_v18 = vrot.slane %v1409_v7, 4 }
 0x3af   : > { %v2520_v57 = vpop.eup %2519  ;;  %v1406_v58 = vmax.f32 %v1404_v43, %v1405_v5  ;;  %v2883_v63 = vadd.f32 %v1475_v51, %v1474_v48  ;;  %v1524_v20 = vor.u32 1.1754944e-38, %v1523_v62  ;;  %v1536_v25 = vand.u32 2147483647, %v2878_v38 }
 0x3b0   : > { %v1513_v61 = vmul.f32 %v2520_v57, %v1462_v26  ;;  %v1482_v3 = vrot.slane %v1481_v60, 1  ;;  %vm1518_vm5 = vweird.f32 %v2520_v57  ;;  %v1448_v17 = vmul.f32 1.442695, %v1436_v1 }
 0x3b1   : > { %v1407_v2 = vrot.slane %v1406_v58, 1  ;;  %v2886_v8 = vpop.eup %2521  ;;  %2523 = vrcp.f32 %v2883_v63  ;;  %v1437_v22 = vsub.f32 %v1421_v29, %v1401_v4  ;;  %v1538_v27 = vand.u32 2147483648, %v2878_v38  ;;  %vm1519_vm7 = vmor %vm1517_vm4, %vm1518_vm5 }
 0x3b2   : > { %v1514_v10 = vsub.f32 1.0, %v1513_v61  ;;  %v1528_v14 = vmul.f32 %v2886_v8, %v2878_v38  ;;  %v2896_v16 = vadd.f32 %v1482_v3, %v1481_v60  ;;  %v1551_v31 = vand.u32 2147483647, %v2883_v63 }
 0x3b3   : > { %v1408_v11 = vmax.f32 %v1406_v58, %v1407_v2  ;;  %vm1533_vm8 = vweird.f32 %v2886_v8  ;;  %v1450_v35 = vmul.f32 1.442695, %v1437_v22  ;;  %v1411_v36 = vmax.f32 %v1409_v7, %v1410_v18 }
 0x3b4   : > { %v1515_v15 = vmul.f32 %v2520_v57, %v1514_v10  ;;  %v1529_v21 = vsub.f32 1.0, %v1528_v14  ;;  %2525 = vrcp.f32 %v2896_v16  ;;  %v1553_v26 = vand.u32 2147483648, %v2883_v63 }
 0x3b5   : > { %v1438_v19 = vsub.f32 %v1422_v9, %v1408_v11  ;;  %2527 = vpow2.f32 %v1448_v17  ;;  %vm1532_vm9 = vweird.f32 %v2878_v38  ;;  %v1423_v47 = vrot.slane %v2863_v6, 4 }
 0x3b6   : > { %v1516_v24 = vadd.f32 %v2520_v57, %v1515_v15  ;;  %v1530_v32 = vmul.f32 %v2886_v8, %v1529_v21  ;;  %vm2914_vm10 = vmor %vm1532_vm9, %vm1533_vm8  ;;  %vm2918_vm11 = vcmp.eq.f32.partialorder %v1536_v25, 8.507059e+37  ;;  %v1412_v50 = vrot.slane %v1411_v36, 2 }
 0x3b7   : > { %v1452_v28 = vmul.f32 1.442695, %v1438_v19  ;;  %v2524_v33 = vpop.eup %2523  ;;  %vm1547_vm12 = vweird.f32 %v2883_v63  ;;  %vm2923_vm13 = vcmp.eq.f32.partialorder %v1551_v31, 8.507059e+37  ;;  %v1539_v40 = vor.u32 1.1754944e-38, %v1538_v27 }
 0x3b8   : > { %v1520_v34 = vsel %vm1519_vm7, %v2520_v57, %v1516_v24  ;;  %v1543_v41 = vmul.f32 %v2524_v33, %v2883_v63  ;;  %v1531_v46 = vadd.f32 %v2886_v8, %v1530_v32  ;;  %vm1548_vm14 = vweird.f32 %v2524_v33 }
 0x3b9   : > { %2529 = vpow2.f32 %v1452_v28  ;;  %v1525_v37 = vsel %vm2890_vm6, %v1524_v20, %v1520_v34  ;;  %v1554_v57 = vor.u32 1.1754944e-38, %v1553_v26  ;;  %vm1562_vm15 = vweird.f32 %v2896_v16  ;;  %vm1549_vm0 = vmor %vm1547_vm12, %vm1548_vm14 }
 0x3ba   : > { %v1526_v43 = vmul.f32 %v2851_v54, %v1525_v37  ;;  %2531 = vpow2.f32 %v1450_v35  ;;  %v1544_v48 = vsub.f32 1.0, %v1543_v41  ;;  %v2526_v51 = vpop.eup %2525  ;;  %v1535_v38 = vsel %vm2914_vm10, %v2886_v8, %v1531_v46 }
 0x3bb   : > { %v2930_v55 = vpop.eup %2527  ;;  %v1558_v29 = vmul.f32 %v2526_v51, %v2896_v16  ;;  %v1566_v58 = vand.u32 2147483647, %v2896_v16  ;;  %v1413_v60 = vmax.f32 %v1411_v36, %v1412_v50  ;;  %v1540_v1 = vsel %vm2918_vm11, %v1539_v40, %v1535_v38 }
 0x3bc   : > { %1634 = vperm.xlu0 %2506, %v1526_v43   ;;  %v1545_v56 = vmul.f32 %v2524_v33, %v1544_v48  ;;  %v1484_v59 = vsel %vm1359_vm3, %v2930_v55, 0.0  ;;  %vm1563_vm1 = vweird.f32 %v2526_v51  ;;  %v1568_v8 = vand.u32 2147483648, %v2896_v16 }
 0x3bd   : > { %v1559_v2 = vsub.f32 1.0, %v1558_v29  ;;  %v1485_v3 = vrot.slane %v1484_v59, 4  ;;  %v1414_v9 = vrot.slane %v1413_v60, 1  ;;  %v1541_v17 = vmul.f32 %v2855_v30, %v1540_v1  ;;  %vm1564_vm4 = vmor %vm1562_vm15, %vm1563_vm1 }
 0x3be   : > { %v1546_v62 = vadd.f32 %v2524_v33, %v1545_v56  ;;  %v1569_v31 = vor.u32 1.1754944e-38, %v1568_v8  ;;  %vm1567_vm5 = vcmp.eq.f32.partialorder %v1566_v58, 8.507059e+37 }
 0x3bf   : > { %v2937_v61 = vpop.eup %2529  ;;  %v1560_v12 = vmul.f32 %v2526_v51, %v1559_v2  ;;  %v1486_v14 = vadd.f32 %v1485_v3, %v1484_v59  ;;  %v1415_v19 = vmax.f32 %v1413_v60, %v1414_v9 }
 0x3c0   : > { %v2941_v4 = vpop.eup %2531  ;;  %v1498_v7 = vsel %vm1359_vm3, %v2937_v61, 0.0  ;;  %v1550_v11 = vsel %vm1549_vm0, %v2524_v33, %v1546_v62 }
 0x3c1   : > { %v1499_v10 = vrot.slane %v1498_v7, 4  ;;  %v1555_v15 = vsel %vm2923_vm13, %v1554_v57, %v1550_v11  ;;  %v1491_v18 = vsel %vm1359_vm3, %v2941_v4, 0.0  ;;  %v1561_v21 = vadd.f32 %v2526_v51, %v1560_v12 }
 0x3c2   : > { %v1556_v63 = vmul.f32 %v2869_v13, %v1555_v15  ;;  %v1487_v22 = vrot.slane %v1486_v14, 2  ;;  %v1492_v24 = vrot.slane %v1491_v18, 4  ;;  %v1439_v25 = vsub.f32 %v1423_v47, %v1415_v19 }
 0x3c3   : > { %v1500_v20 = vadd.f32 %v1499_v10, %v1498_v7  ;;  %v1565_v28 = vsel %vm1564_vm4, %v2526_v51, %v1561_v21 }
 0x3c4   : > { %1643 = vperm.xlu0 %2506, %v1541_v17   ;;  %1652 = vperm.xlu1 %2507, %v1556_v63   ;;  %v1488_v30 = vadd.f32 %v1487_v22, %v1486_v14  ;;  %v1493_v32 = vadd.f32 %v1492_v24, %v1491_v18  ;;  %v1454_v33 = vmul.f32 1.442695, %v1439_v25  ;;  %v1570_v13 = vsel %vm1567_vm5, %v1569_v31, %v1565_v28 }
 0x3c5   : > { %v1501_v27 = vrot.slane %v1500_v20, 2  ;;  %v1571_v16 = vmul.f32 %v2873_v23, %v1570_v13 }
 0x3c6   : > { %v1489_v35 = vrot.slane %v1488_v30, 1  ;;  %v1494_v36 = vrot.slane %v1493_v32, 2  ;;  %2533 = vpow2.f32 %v1454_v33 }
 0x3c7   : > { %v1502_v34 = vadd.f32 %v1501_v27, %v1500_v20 }
 0x3c8   : > { %v1490_v37 = vadd.f32 %v1489_v35, %v1488_v30  ;;  %v1495_v26 = vadd.f32 %v1494_v36, %v1493_v32 }
 0x3c9   : > { %v1503_v41 = vrot.slane %v1502_v34, 1 }
 0x3ca   : > { %2535 = vrcp.f32 %v1490_v37  ;;  %v1496_v46 = vrot.slane %v1495_v26, 1  ;;  %v1581_v38 = vand.u32 2147483647, %v1490_v37  ;;  %v1583_v23 = vand.u32 2147483648, %v1490_v37 }
 0x3cb   : > { %v1504_v43 = vadd.f32 %v1503_v41, %v1502_v34  ;;  %vm1577_vm7 = vweird.f32 %v1490_v37 }
 0x3cc   : > { %1661 = vperm.xlu1 %2507, %v1571_v16   ;;  %v2958_v47 = vpop.eup %2533  ;;  %v1497_v48 = vadd.f32 %v1496_v46, %v1495_v26  ;;  %vm1582_vm8 = vcmp.eq.f32.partialorder %v1581_v38, 8.507059e+37  ;;  %v1584_v3 = vor.u32 1.1754944e-38, %v1583_v23 }
 0x3cd   : > { %2537 = vrcp.f32 %v1504_v43  ;;  %v1505_v5 = vsel %vm1359_vm3, %v2958_v47, 0.0  ;;  %v1613_v59 = vand.u32 2147483648, %v1504_v43  ;;  %vm1607_vm9 = vweird.f32 %v1504_v43 }
 0x3ce   : > { %v1506_v49 = vrot.slane %v1505_v5, 4  ;;  %2539 = vrcp.f32 %v1497_v48  ;;  %v1611_v10 = vand.u32 2147483647, %v1504_v43  ;;  %v1596_v19 = vand.u32 2147483647, %v1497_v48 }
 0x3cf   : > { %v1614_v12 = vor.u32 1.1754944e-38, %v1613_v59  ;;  %v1598_v20 = vand.u32 2147483648, %v1497_v48  ;;  %vm1592_vm14 = vweird.f32 %v1497_v48 }
 0x3d0   : > { %v2536_v50 = vpop.eup %2535  ;;  %v1507_v54 = vadd.f32 %v1506_v49, %v1505_v5  ;;  %vm1612_vm13 = vcmp.eq.f32.partialorder %v1611_v10, 8.507059e+37  ;;  %vm1597_vm0 = vcmp.eq.f32.partialorder %v1596_v19, 8.507059e+37 }
 0x3d1   : > { %v1573_v51 = vmul.f32 %v2536_v50, %v1490_v37  ;;  %vm1578_vm6 = vweird.f32 %v2536_v50  ;;  %v1599_v28 = vor.u32 1.1754944e-38, %v1598_v20 }
 0x3d2   : > { %v1508_v57 = vrot.slane %v1507_v54, 2  ;;  %vm1579_vm3 = vmor %vm1577_vm7, %vm1578_vm6  ;;  %vm1784_vm7 = vcmask 1041409  }
 0x3d3   : > { %v2538_v40 = vpop.eup %2537  ;;  %v1574_v56 = vsub.f32 1.0, %v1573_v51 }
 0x3d4   : > { %v1603_v29 = vmul.f32 %v2538_v40, %v1504_v43  ;;  %v1509_v60 = vadd.f32 %v1508_v57, %v1507_v54  ;;  %v2540_v62 = vpop.eup %2539  ;;  %vm1608_vm10 = vweird.f32 %v2538_v40 }
 0x3d5   : > { %v1575_v58 = vmul.f32 %v2536_v50, %v1574_v56  ;;  %v1588_v7 = vmul.f32 %v2540_v62, %v1497_v48  ;;  %vm1609_vm11 = vmor %vm1607_vm9, %vm1608_vm10  ;;  %vm1593_vm12 = vweird.f32 %v2540_v62  ;;  %v2661_v48 = vmov 839922192  }
 0x3d6   : > { %v1604_v1 = vsub.f32 1.0, %v1603_v29  ;;  %v1510_v8 = vrot.slane %v1509_v60, 1  ;;  %vm1594_vm15 = vmor %vm1592_vm14, %vm1593_vm12  ;;  %vm1792_vm9 = vcmask 1045509   ;;  %vm1794_vm10 = vcmask 1046534  }
 0x3d7   : > { %v1576_v2 = vadd.f32 %v2536_v50, %v1575_v58  ;;  %v1589_v14 = vsub.f32 1.0, %v1588_v7 }
 0x3d8   : > { %v1605_v9 = vmul.f32 %v2538_v40, %v1604_v1  ;;  %v1511_v15 = vadd.f32 %v1510_v8, %v1509_v60 }
 0x3d9   : > { %v1580_v11 = vsel %vm1579_vm3, %v2536_v50, %v1576_v2  ;;  %v1590_v21 = vmul.f32 %v2540_v62, %v1589_v14  ;;  %vm1790_vm3 = vcmask 1044484  }
 0x3da   : > { %v1585_v17 = vsel %vm1582_vm8, %v1584_v3, %v1580_v11  ;;  %v1606_v18 = vadd.f32 %v2538_v40, %v1605_v9  ;;  %2541 = vrcp.f32 %v1511_v15  ;;  %v1628_v35 = vand.u32 2147483648, %v1511_v15 }
 0x3db   : > { %v1586_v63 = vmul.f32 %v2930_v55, %v1585_v17  ;;  %v1591_v25 = vadd.f32 %v2540_v62, %v1590_v21  ;;  %v1626_v36 = vand.u32 2147483647, %v1511_v15  ;;  %vm1622_vm4 = vweird.f32 %v1511_v15 }
 0x3dc   : > { %v1610_v22 = vsel %vm1609_vm11, %v2538_v40, %v1606_v18  ;;  %vm1786_vm8 = vcmask 1042434   ;;  %vm1796_vm11 = vcmask 1047559  }
 0x3dd   : > { %1670 = vperm.xlu2 %2508, %v1586_v63   ;;  %v1615_v24 = vsel %vm1612_vm13, %v1614_v12, %v1610_v22  ;;  %v1595_v30 = vsel %vm1594_vm15, %v2540_v62, %v1591_v25  ;;  %vm1627_vm6 = vcmp.eq.f32.partialorder %v1626_v36, 8.507059e+37 }
 0x3de   : > { %v1616_v27 = vmul.f32 %v2937_v61, %v1615_v24  ;;  %v1600_v31 = vsel %vm1597_vm0, %v1599_v28, %v1595_v30  ;;  %v1629_v61 = vor.u32 1.1754944e-38, %v1628_v35 }
 0x3df   : > { %v1601_v33 = vmul.f32 %v2941_v4, %v1600_v31  ;;  %v1638_v4 = vunpack.c.l.s4 %v2661_v48 }
 0x3e0   : > { %1688 = vperm.xlu0 %2506, %v1616_v27   ;;  %v2542_v32 = vpop.eup %2541 }
 0x3e1   : > { %v1618_v55 = vmul.f32 %v2542_v32, %v1511_v15  ;;  %vm1623_vm1 = vweird.f32 %v2542_v32  ;;  %v2966_v49 = vunpack.c.0.s8 %v1638_v4 }
 0x3e2   : > { %vm1624_vm5 = vmor %vm1622_vm4, %vm1623_vm1 }
 0x3e3   : > { %v1619_v34 = vsub.f32 1.0, %v1618_v55 }
 0x3e5   : > { %1679 = vperm.xlu2 %2508, %v1601_v33   ;;  %v1620_v13 = vmul.f32 %v2542_v32, %v1619_v34 }
 0x3e7   : > { %v1621_v37 = vadd.f32 %v2542_v32, %v1620_v13 }
 0x3e9   : > { %v1625_v41 = vsel %vm1624_vm5, %v2542_v32, %v1621_v37 }
 0x3ea   : > { %v1630_v26 = vsel %vm1627_vm6, %v1629_v61, %v1625_v41 }
 0x3eb   : > { %v1631_v16 = vmul.f32 %v2958_v47, %v1630_v26 }
 0x3ed   : > { %1697 = vperm.xlu1 %2507, %v1631_v16  }
 0x42e   : > { %v1635_v43 = vpop.permute.xlu0 %1634 }
 0x42f   : > { %v1640_v38 = vperm.slane %v1635_v43, %v2966_v49 }
 0x431   : > { %v1704_v23 = vmul.f32 %v1640_v38, %v2814_v42 }
 0x433   : > { %v1712_v62 = vsel %vm1311_vm2, %v1704_v23, 0.0 }
 0x434   : > { %v1713_v7 = vrot.slane %v1712_v62, 4 }
 0x436   : > { %v1653_v46 = vpop.permute.xlu1 %1652  ;;  %v1644_v5 = vpop.permute.xlu0 %1643  ;;  %v1714_v10 = vadd.f32 %v1713_v7, %v1712_v62 }
 0x437   : > { %v1671_v50 = vpop.permute.xlu2 %1670  ;;  %v1649_v51 = vperm.slane %v1644_v5, %v2966_v49  ;;  %v1658_v40 = vperm.slane %v1653_v46, %v2966_v49 }
 0x438   : > { %v1676_v59 = vperm.slane %v1671_v50, %v2966_v49  ;;  %v1715_v63 = vrot.slane %v1714_v10, 2 }
 0x439   : > { %v1705_v56 = vmul.f32 %v1649_v51, %v2817_v44  ;;  %v1706_v57 = vmul.f32 %v1658_v40, %v2824_v53 }
 0x43a   : > { %v1708_v42 = vmul.f32 %v1676_v59, %v2841_v39  ;;  %v1716_v28 = vadd.f32 %v1715_v63, %v1714_v10 }
 0x43b   : > { %v1719_v29 = vsel %vm1311_vm2, %v1705_v56, 0.0  ;;  %v1726_v1 = vsel %vm1311_vm2, %v1706_v57, 0.0 }
 0x43c   : > { %v1720_v2 = vrot.slane %v1719_v29, 4  ;;  %v1727_v53 = vrot.slane %v1726_v1, 4  ;;  %v1740_v11 = vsel %vm1311_vm2, %v1708_v42, 0.0  ;;  %v1717_v13 = vrot.slane %v1716_v28, 1 }
 0x43d   : > { %v1741_v18 = vrot.slane %v1740_v11, 4 }
 0x43e   : > { %v1662_v54 = vpop.permute.xlu1 %1661  ;;  %v1721_v8 = vadd.f32 %v1720_v2, %v1719_v29  ;;  %v1728_v12 = vadd.f32 %v1727_v53, %v1726_v1  ;;  %v1718_v16 = vadd.f32 %v1717_v13, %v1716_v28 }
 0x43f   : > { %v1667_v47 = vperm.slane %v1662_v54, %v2966_v49  ;;  %v1680_v60 = vpop.permute.xlu2 %1679 }
 0x440   : > { %v1685_v44 = vperm.slane %v1680_v60, %v2966_v49  ;;  %v1722_v14 = vrot.slane %v1721_v8, 2  ;;  %v1729_v21 = vrot.slane %v1728_v12, 2 }
 0x441   : > { %v1707_v58 = vmul.f32 %v1667_v47, %v2827_v52 }
 0x442   : > { %v1709_v52 = vmul.f32 %v1685_v44, %v2844_v45  ;;  %v1723_v22 = vadd.f32 %v1722_v14, %v1721_v8  ;;  %v1742_v45 = vadd.f32 %v1741_v18, %v1740_v11  ;;  %v1730_v31 = vadd.f32 %v1729_v21, %v1728_v12 }
 0x443   : > { %v1733_v3 = vsel %vm1311_vm2, %v1707_v58, 0.0 }
 0x444   : > { %v1734_v9 = vrot.slane %v1733_v3, 4  ;;  %v1747_v19 = vsel %vm1311_vm2, %v1709_v52, 0.0  ;;  %v1724_v32 = vrot.slane %v1723_v22, 1  ;;  %v1743_v35 = vrot.slane %v1742_v45, 2 }
 0x445   : > { %v1748_v24 = vrot.slane %v1747_v19, 4  ;;  %v1731_v36 = vrot.slane %v1730_v31, 1 }
 0x446   : > { %v1735_v15 = vadd.f32 %v1734_v9, %v1733_v3  ;;  %v1725_v61 = vadd.f32 %v1724_v32, %v1723_v22  ;;  %v1744_v26 = vadd.f32 %v1743_v35, %v1742_v45 }
 0x447   : > { %v1749_v55 = vadd.f32 %v1748_v24, %v1747_v19  ;;  %v1732_v46 = vadd.f32 %v1731_v36, %v1730_v31 }
 0x448   : > { %v1736_v25 = vrot.slane %v1735_v15, 2  ;;  %2543 = vtanh.f32 %v1725_v61  ;;  %v1745_v51 = vrot.slane %v1744_v26, 1 }
 0x449   : > { %v1750_v41 = vrot.slane %v1749_v55, 2  ;;  %2545 = vtanh.f32 %v1718_v16 }
 0x44a   : > { %v1737_v33 = vadd.f32 %v1736_v25, %v1735_v15  ;;  %2547 = vtanh.f32 %v1732_v46  ;;  %v1746_v23 = vadd.f32 %v1745_v51, %v1744_v26 }
 0x44b   : > { %v1751_v5 = vadd.f32 %v1750_v41, %v1749_v55 }
 0x44d   : > { %v1752_v56 = vrot.slane %v1751_v5, 1 }
 0x44e   : > { %v2544_v57 = vpop.eup %2543 }
 0x44f   : > { %v2546_v58 = vpop.eup %2545  ;;  %v1753_v59 = vadd.f32 %v1752_v56, %v1751_v5 }
 0x450   : > { %v1785_v62 = vsel %vm1784_vm7, %v2544_v57, %v2546_v58 }
 0x452   : > { %v1689_v17 = vpop.permute.xlu0 %1688 }
 0x453   : > { %v1694_v20 = vperm.slane %v1689_v17, %v2966_v49 }
 0x455   : > { %v1710_v39 = vmul.f32 %v1694_v20, %v2860_v0  ;;  %v1738_v0 = vrot.slane %v1737_v33, 1 }
 0x457   : > { %v1754_v27 = vsel %vm1311_vm2, %v1710_v39, 0.0  ;;  %v1739_v50 = vadd.f32 %v1738_v0, %v1737_v33 }
 0x458   : > { %v1755_v30 = vrot.slane %v1754_v27, 4 }
 0x459   : > { %2549 = vtanh.f32 %v1739_v50 }
 0x45a   : > { %v1756_v34 = vadd.f32 %v1755_v30, %v1754_v27  ;;  %2551 = vtanh.f32 %v1746_v23 }
 0x45c   : > { %v1757_v37 = vrot.slane %v1756_v34, 2 }
 0x45e   : > { %v1758_v48 = vadd.f32 %v1757_v37, %v1756_v34 }
 0x45f   : > { %v1698_v43 = vpop.permute.xlu1 %1697 }
 0x460   : > { %v1703_v4 = vperm.slane %v1698_v43, %v2966_v49  ;;  %v1759_v38 = vrot.slane %v1758_v48, 1 }
 0x462   : > { %v1711_v54 = vmul.f32 %v1703_v4, %v2863_v6  ;;  %v1760_v49 = vadd.f32 %v1759_v38, %v1758_v48  ;;  %v2548_v6 = vpop.eup %2547 }
 0x463   : > { %v2550_v1 = vpop.eup %2549  ;;  %v1787_v3 = vsel %vm1786_vm8, %v2548_v6, %v1785_v62 }
 0x464   : > { %v1761_v40 = vsel %vm1311_vm2, %v1711_v54, 0.0  ;;  %vm1788_vm2 = vcmask 1043459   ;;  %2553 = vtanh.f32 %v1760_v49  ;;  %v2552_v53 = vpop.eup %2551 }
 0x465   : > { %v1762_v47 = vrot.slane %v1761_v40, 4  ;;  %2555 = vtanh.f32 %v1753_v59  ;;  %v1789_v7 = vsel %vm1788_vm2, %v2550_v1, %v1787_v3 }
 0x466   : > { %v1791_v8 = vsel %vm1790_vm3, %v2552_v53, %v1789_v7 }
 0x467   : > { %v1763_v29 = vadd.f32 %v1762_v47, %v1761_v40 }
 0x469   : > { %v1764_v60 = vrot.slane %v1763_v29, 2 }
 0x46a   : > { %v2554_v9 = vpop.eup %2553 }
 0x46b   : > { %v1765_v2 = vadd.f32 %v1764_v60, %v1763_v29  ;;  %v2556_v52 = vpop.eup %2555 }
 0x46c   : > { %v1793_v10 = vsel %vm1792_vm9, %v2556_v52, %v1791_v8 }
 0x46d   : > { %v1766_v44 = vrot.slane %v1765_v2, 1  ;;  %v1795_v11 = vsel %vm1794_vm10, %v2554_v9, %v1793_v10 }
 0x46f   : > { %v1767_v42 = vadd.f32 %v1766_v44, %v1765_v2 }
 0x471   : > { %2557 = vtanh.f32 %v1767_v42 }
 0x477   : > { %v2558_v12 = vpop.eup %2557 }
 0x478   : > { %v1797_v14 = vsel %vm1796_vm11, %v2558_v12, %v1795_v11 }
 0x479   : > { %1799 = vst [vmem:[%s208_s7] sm:$0xff] %v1797_v14 }
 0x47a   : > { %2616 = shalt.err (!%p2613_p8)
}
 0x47b   : > { %2456 = dma.vmem_to_hbm [thread:$0]  (%p2725_p5), %s1814_s8, 128, %s1816_s9, %s1801_s19  }
 0x47c PF: > { %p2468_p9 = scmp.ge.s32.totalorder %s2655_s18, 2  ;;  %s1827_s23 = sand.u32 1, %s2643_s15  }
 0x47d   : > { %s1828_s27 = scalar_lea.sflag [#allocation4], %s1827_s23 }
 0x47e   : > { %p2463_p10 = pnand %p2468_p9, %p2729_p6 }
 0x480   : > { %p2464_p11 = pneg %p2463_p10 }
 0x482   : > { %2638 = dma.done.wait (%p2464_p11), %s1828_s27, 128  }
 0x483   : > { %2640 = vsyncadd (%p2464_p11), %s1828_s27, 4294967168  ;;  %p15_p12 = scmp.ge.s32.totalorder %s2712_s21, 4   ;;  %s3043_s15 = smov %s2647_s16 }
 0x484   : > { %s3044_s16 = smov %s2651_s17  ;;  %s3045_s17 = smov %s2723_s24 }
 0x485   : > { %s3046_s18 = smov %s2712_s21  ;;  %17 = sbr.rel (!%p15_p12) target bundleno = 4 (0x4), region = 79 }
 0x48a   :  { %1834 = vsyncpa [#allocation3], 1 }
 0x48b   :  { %1836 = vsyncpa [#allocation3 + $0x1], 1 }
 0x48c   :  { %1837 = vsyncpa [#allocation4], 1 }
 0x48d   :  { %1839 = vsyncpa [#allocation4 + $0x1], 1 }

</bundles_post_ra>
